<compile_context>
chip_gen: v7x
topology: tpu7x:2x2x1
jax: 0.10.0
libtpu: 0.0.40
codegen_flags: <defaults>
</compile_context>

<pallas_src>
import functools

import jax
import jax.numpy as jnp
from jax.experimental import pallas as pl
from jax.experimental.pallas import tpu as pltpu


# ---------------------------------------------------------------------------
# Kernels
# ---------------------------------------------------------------------------
def xlstm_cell_kernel_single_k(x_ref, w_ref, b_ref, eg_ref, g_ref, bt_ref,
                               o_ref):
    """Single-k path: grid = (batch_tiles,). No accumulator scratch.

    x_ref : (TB, H)   bf16
    w_ref : (H, 4H)   bf16 fused gate weight
    b_ref : (1, 4H)   f32 fused gate bias
    eg_ref/g_ref/bt_ref : (1, H) f32
    o_ref : (TB, H)
    """
    H = o_ref.shape[1]
    x = x_ref[...]

    # Per-gate matmuls on statically sliced weight-ref slabs (lane aligned,
    # H % 128 == 0) -> never materializes a (TB, 4H) value.
    def gate(g):
        return jnp.dot(x, w_ref[:, g * H:(g + 1) * H],
                       preferred_element_type=jnp.float32) \
               + b_ref[:, g * H:(g + 1) * H]

    forget = jax.nn.sigmoid(gate(0))
    input_g = jax.nn.sigmoid(gate(1))
    candidate = jnp.tanh(gate(2))
    output = jax.nn.sigmoid(gate(3))

    exp_factor = jnp.exp(eg_ref[...] * input_g)          # (1,H) broadcasts
    cell_state = forget * candidate * exp_factor
    hidden = output * jnp.tanh(cell_state)               # (TB, H) f32

    # LayerNorm over hidden dim (PyTorch semantics: biased var, eps=1e-5).
    mean = jnp.mean(hidden, axis=-1, keepdims=True)
    centered = hidden - mean
    var = jnp.mean(centered * centered, axis=-1, keepdims=True)
    normed = centered * jax.lax.rsqrt(var + 1e-5)

    o_ref[...] = (normed * g_ref[...] + bt_ref[...]).astype(o_ref.dtype)


def xlstm_cell_kernel_acc(x_ref, w_ref, b_ref, eg_ref, g_ref, bt_ref,
                          o_ref, acc_ref):
    """Multi-k path: grid = (batch_tiles, k_tiles); k (over H) is last.

    x_ref  : (TB, TK)  bf16
    w_ref  : (TK, 4H)  bf16
    b_ref  : (1, 4H)   f32
    eg_ref/g_ref/bt_ref : (1, H) f32
    o_ref  : (TB, H)   (same block for every k -> resident accumulator output)
    acc_ref: (TB, 4H)  f32 VMEM scratch
    """
    k = pl.program_id(1)

    @pl.when(k == 0)
    def _init():
        acc_ref[...] = jnp.zeros_like(acc_ref)

    # Partial fused-gate matmul: bf16 x bf16 -> f32 accumulate on the MXU.
    acc_ref[...] += jnp.dot(x_ref[...], w_ref[...],
                            preferred_element_type=jnp.float32)

    @pl.when(k == pl.num_programs(1) - 1)
    def _finalize():
        H = o_ref.shape[1]

        # Slice the accumulator REF per gate (static, lane-aligned -> free);
        # no (TB, 4H) z temp is ever materialized.
        def gate(g):
            return acc_ref[:, g * H:(g + 1) * H] + b_ref[:, g * H:(g + 1) * H]

        forget = jax.nn.sigmoid(gate(0))
        input_g = jax.nn.sigmoid(gate(1))
        candidate = jnp.tanh(gate(2))
        output = jax.nn.sigmoid(gate(3))

        exp_factor = jnp.exp(eg_ref[...] * input_g)
        cell_state = forget * candidate * exp_factor
        hidden = output * jnp.tanh(cell_state)

        mean = jnp.mean(hidden, axis=-1, keepdims=True)
        centered = hidden - mean
        var = jnp.mean(centered * centered, axis=-1, keepdims=True)
        normed = centered * jax.lax.rsqrt(var + 1e-5)

        o_ref[...] = (normed * g_ref[...] + bt_ref[...]).astype(o_ref.dtype)


# ---------------------------------------------------------------------------
# VMEM-budget-aware tile selection
# ---------------------------------------------------------------------------
_VMEM_BUDGET = 44 * 1024 * 1024          # working-set target (fits v7x)
_VMEM_LIMIT = 56 * 1024 * 1024           # scoped limit, headroom on 64 MiB v7x


def _vmem_bytes(tb, tk, H, out_bytes, single_k):
    x_b = 2 * tb * tk * 2                    # double-buffered bf16 x tile
    w_b = 2 * tk * 4 * H * 2                 # double-buffered bf16 weight tile
    acc_b = 0 if single_k else tb * 4 * H * 4
    o_b = 2 * tb * H * out_bytes             # double-buffered output tile
    par_b = (4 * H + 3 * H) * 4 * 2          # bias + exp_gate/gamma/beta
    return x_b + w_b + acc_b + o_b + par_b


def _select_tiles(Bp, H, out_bytes, max_tb=None, max_tk=None):
    # Prefer a single batch tile: weight HBM traffic = (Bp/TB) * H * 4H * 2B.
    tb_cands = []
    if Bp <= 512:
        tb_cands.append(Bp)
    tb_cands += [c for c in (512, 256, 128, 64, 32, 16)
                 if c < Bp and Bp % c == 0]
    if max_tb is not None:
        tb_cands = [c for c in tb_cands if c <= max_tb]

    tk_cands = []
    if H <= 1024:
        tk_cands.append(H)
    tk_cands += [c for c in (1024, 512, 256, 128) if c < H and H % c == 0]
    if max_tk is not None:
        tk_cands = [c for c in tk_cands if c <= max_tk]

    assert tb_cands and tk_cands, "no legal tile candidates"
    for tb in tb_cands:
        for tk in tk_cands:
            if _vmem_bytes(tb, tk, H, out_bytes, tk == H) <= _VMEM_BUDGET:
                return tb, tk
    return tb_cands[-1], tk_cands[-1]


# ---------------------------------------------------------------------------
# Wrapper
# ---------------------------------------------------------------------------
@functools.partial(jax.jit, static_argnames=("out_dtype", "max_tb", "max_tk"))
def xlstm_cell(x, w_all, b_all, exp_gate, ln_gamma, ln_beta, *,
               out_dtype=None, max_tb=None, max_tk=None):
    """x: (B, H); w_all: (H, 4H) (pre-cast to bf16 by the caller, once);
    b_all: (4H,); exp_gate/ln_gamma/ln_beta: (H,)."""
    B, H = x.shape
    assert H % 128 == 0, "hidden size must be a multiple of 128 (lane-aligned)"
    if out_dtype is None:
        out_dtype = x.dtype
    out_bytes = jnp.dtype(out_dtype).itemsize

    # The caller should pass the fused weight already in bf16 (cast once at
    # init). The fallback cast below is only a safety net; avoid it in any
    # per-timestep loop — it re-reads/re-writes the whole (H,4H) weight in HBM.
    if w_all.dtype != jnp.bfloat16:
        w_all = w_all.astype(jnp.bfloat16)
    x_bf = x.astype(jnp.bfloat16)            # tiny (B, H) cast

    # Pad batch to a multiple of 16 (bf16 packs two rows per sublane).
    Bp = ((B + 15) // 16) * 16
    if Bp != B:
        x_bf = jnp.pad(x_bf, ((0, Bp - B), (0, 0)))

    TB, TK = _select_tiles(Bp, H, out_bytes, max_tb, max_tk)

    b2 = b_all.reshape(1, 4 * H).astype(jnp.float32)
    eg2 = exp_gate.reshape(1, H).astype(jnp.float32)
    g2 = ln_gamma.reshape(1, H).astype(jnp.float32)
    bt2 = ln_beta.reshape(1, H).astype(jnp.float32)

    if TK == H:
        # Single contraction step: no accumulator scratch, 1-D grid.
        kernel = xlstm_cell_kernel_single_k
        grid_spec = pltpu.PrefetchScalarGridSpec(
            num_scalar_prefetch=0,
            grid=(Bp // TB,),
            in_specs=[
                pl.BlockSpec((TB, H), lambda b: (b, 0)),          # x
                pl.BlockSpec((H, 4 * H), lambda b: (0, 0)),       # fused W
                pl.BlockSpec((1, 4 * H), lambda b: (0, 0)),       # fused bias
                pl.BlockSpec((1, H), lambda b: (0, 0)),           # exp_gate
                pl.BlockSpec((1, H), lambda b: (0, 0)),           # ln gamma
                pl.BlockSpec((1, H), lambda b: (0, 0)),           # ln beta
            ],
            out_specs=pl.BlockSpec((TB, H), lambda b: (b, 0)),
        )
        dims = ("parallel",)
    else:
        kernel = xlstm_cell_kernel_acc
        grid_spec = pltpu.PrefetchScalarGridSpec(
            num_scalar_prefetch=0,
            grid=(Bp // TB, H // TK),
            in_specs=[
                pl.BlockSpec((TB, TK), lambda b, k: (b, k)),      # x
                pl.BlockSpec((TK, 4 * H), lambda b, k: (k, 0)),   # fused W
                pl.BlockSpec((1, 4 * H), lambda b, k: (0, 0)),    # fused bias
                pl.BlockSpec((1, H), lambda b, k: (0, 0)),        # exp_gate
                pl.BlockSpec((1, H), lambda b, k: (0, 0)),        # ln gamma
                pl.BlockSpec((1, H), lambda b, k: (0, 0)),        # ln beta
            ],
            out_specs=pl.BlockSpec((TB, H), lambda b, k: (b, 0)),
            scratch_shapes=[pltpu.VMEM((TB, 4 * H), jnp.float32)],
        )
        dims = ("parallel", "arbitrary")

    out = pl.pallas_call(
        kernel,
        out_shape=jax.ShapeDtypeStruct((Bp, H), out_dtype),
        grid_spec=grid_spec,
        compiler_params=pltpu.CompilerParams(
            dimension_semantics=dims,
            vmem_limit_bytes=_VMEM_LIMIT,
        ),
    )(x_bf, w_all, b2, eg2, g2, bt2)

    return out[:B] if Bp != B else out


# ---------------------------------------------------------------------------
# Parameters + pure-JAX reference
# ---------------------------------------------------------------------------
def init_params(key, hidden_size):
    """Synthetic params matching the PyTorch module's shapes.

    PyTorch Linear stores weight as (out, in) and computes x @ W.T + b; we
    directly build the transposed (in, out) matrices and concatenate them
    column-wise as [forget | input | candidate | output].
    """
    keys = jax.random.split(key, 8)
    scale = 1.0 / jnp.sqrt(hidden_size)
    ws = [jax.random.uniform(keys[i], (hidden_size, hidden_size),
                             jnp.float32, -scale, scale) for i in range(4)]
    bs = [jax.random.uniform(keys[4 + i], (hidden_size,),
                             jnp.float32, -scale, scale) for i in range(4)]
    w_all = jnp.concatenate(ws, axis=1)                       # (H, 4H) f32
    b_all = jnp.concatenate(bs, axis=0)                       # (4H,)
    exp_gate = jnp.full((hidden_size,), 0.1, jnp.float32)     # nn.Parameter(ones*0.1)
    ln_gamma = jnp.ones((hidden_size,), jnp.float32)          # LayerNorm weight
    ln_beta = jnp.zeros((hidden_size,), jnp.float32)          # LayerNorm bias
    return w_all, b_all, exp_gate, ln_gamma, ln_beta


def xlstm_cell_ref(x, w_all, b_all, exp_gate, ln_gamma, ln_beta):
    """Pure-JAX reference mirroring the PyTorch forward exactly (f32)."""
    H = x.shape[1]
    z = x @ w_all + b_all
    forget = jax.nn.sigmoid(z[:, 0 * H:1 * H])
    input_g = jax.nn.sigmoid(z[:, 1 * H:2 * H])
    candidate = jnp.tanh(z[:, 2 * H:3 * H])
    output = jax.nn.sigmoid(z[:, 3 * H:4 * H])
    exp_factor = jnp.exp(exp_gate[None, :] * input_g)
    cell_state = forget * candidate * exp_factor
    hidden = output * jnp.tanh(cell_state)
    mean = jnp.mean(hidden, axis=-1, keepdims=True)
    var = jnp.mean((hidden - mean) ** 2, axis=-1, keepdims=True)
    normed = (hidden - mean) * jax.lax.rsqrt(var + 1e-5)
    return normed * ln_gamma[None, :] + ln_beta[None, :]


# ---------------------------------------------------------------------------
# Demo / correctness check
# ---------------------------------------------------------------------------
if __name__ == "__main__":
    key = jax.random.PRNGKey(0)
    k_x, k_p = jax.random.split(key)

    # Lane-aligned hidden size; batch kept small for the demo.
    batch, hidden = 48, 256
    x = jax.random.normal(k_x, (batch, hidden), jnp.float32)
    w_all, b_all, exp_gate, ln_gamma, ln_beta = init_params(k_p, hidden)

    # Cast the fused weight to bf16 ONCE here (never inside a per-step loop).
    w_bf = w_all.astype(jnp.bfloat16)

    # Reference computed from the same bf16-rounded activations/weights so the
    # only difference vs. the kernel is f32 accumulation order / EUP approx.
    x_r = x.astype(jnp.bfloat16).astype(jnp.float32)
    w_r = w_bf.astype(jnp.float32)
    ref = xlstm_cell_ref(x_r, w_r, b_all, exp_gate, ln_gamma, ln_beta)

    # 1) Default (auto-tiled) path: single batch tile, single k step.
    out = jax.block_until_ready(
        xlstm_cell(x, w_bf, b_all, exp_gate, ln_gamma, ln_beta))
    assert out.shape == (batch, hidden)
    err = jnp.max(jnp.abs(out.astype(jnp.float32) - ref))
    assert jnp.allclose(out.astype(jnp.float32), ref, atol=2e-2, rtol=2e-2), \
        f"single-k path max abs err {err}"

    # 2) Force the tiled accumulator path (multi batch tile + multi k step).
    out_tiled = jax.block_until_ready(
        xlstm_cell(x, w_bf, b_all, exp_gate, ln_gamma, ln_beta,
                   max_tb=16, max_tk=128))
    err_t = jnp.max(jnp.abs(out_tiled.astype(jnp.float32) - ref))
    assert jnp.allclose(out_tiled.astype(jnp.float32), ref, atol=2e-2, rtol=2e-2), \
        f"tiled path max abs err {err_t}"

    print("KERNEL_OK")
</pallas_src>

<mosaic_0001>
module attributes {stable_mosaic.version = 11 : i64} {
  func.func @xlstm_cell_kernel_single_k(%arg0: i32, %arg1: memref<48x256xbf16, #tpu.memory_space<vmem>>, %arg2: memref<256x1024xbf16, #tpu.memory_space<vmem>>, %arg3: memref<1x1024xf32, #tpu.memory_space<vmem>>, %arg4: memref<1x256xf32, #tpu.memory_space<vmem>>, %arg5: memref<1x256xf32, #tpu.memory_space<vmem>>, %arg6: memref<1x256xf32, #tpu.memory_space<vmem>>, %arg7: memref<48x256xf32, #tpu.memory_space<vmem>>) attributes {dimension_semantics = [#tpu.dimension_semantics<parallel>], iteration_bounds = array<i64: 1>, scalar_prefetch = 0 : i64, scratch_operands = 0 : i64, tpu.core_type = #tpu.core_type<tc>, window_params = [{transform_indices = @transform_0, window_bounds = array<i64: 48, 256>}, {pipeline_mode = #tpu.pipeline_mode<synchronous>, transform_indices = @transform_1, window_bounds = array<i64: 256, 1024>}, {pipeline_mode = #tpu.pipeline_mode<synchronous>, transform_indices = @transform_2, window_bounds = array<i64: 1, 1024>}, {pipeline_mode = #tpu.pipeline_mode<synchronous>, transform_indices = @transform_3, window_bounds = array<i64: 1, 256>}, {pipeline_mode = #tpu.pipeline_mode<synchronous>, transform_indices = @transform_4, window_bounds = array<i64: 1, 256>}, {pipeline_mode = #tpu.pipeline_mode<synchronous>, transform_indices = @transform_5, window_bounds = array<i64: 1, 256>}, {transform_indices = @transform_6, window_bounds = array<i64: 48, 256>}]} {
    %c0 = arith.constant 0 : index
    %c0_0 = arith.constant 0 : index
    %0 = vector.load %arg1[%c0, %c0_0] : memref<48x256xbf16, #tpu.memory_space<vmem>>, vector<48x256xbf16>
    %c0_1 = arith.constant 0 : index
    %c0_2 = arith.constant 0 : index
    %1 = vector.load %arg2[%c0_1, %c0_2] : memref<256x1024xbf16, #tpu.memory_space<vmem>>, vector<256x256xbf16>
    %cst = arith.constant dense<0.000000e+00> : vector<48x256xf32>
    %2 = tpu.matmul %0, %1, %cst {dimension_numbers = #tpu.dot_dimension_numbers<[1], [0], [0], [1], [0, 0, 1, 1], [], []>} : vector<48x256xbf16>, vector<256x256xbf16>, vector<48x256xf32> -> vector<48x256xf32>
    %c0_3 = arith.constant 0 : index
    %c0_4 = arith.constant 0 : index
    %3 = vector.load %arg3[%c0_3, %c0_4] : memref<1x1024xf32, #tpu.memory_space<vmem>>, vector<1x256xf32>
    %4 = vector.broadcast %3 : vector<1x256xf32> to vector<48x256xf32>
    %5 = arith.addf %2, %4 : vector<48x256xf32>
    %6 = arith.negf %5 : vector<48x256xf32>
    %7 = math.exp %6 : vector<48x256xf32>
    %cst_5 = arith.constant 1.000000e+00 : f32
    %8 = vector.broadcast %cst_5 : f32 to vector<48x256xf32>
    %9 = arith.addf %8, %7 : vector<48x256xf32>
    %10 = arith.divf %8, %9 : vector<48x256xf32>
    %c0_6 = arith.constant 0 : index
    %c256 = arith.constant 256 : index
    %11 = vector.load %arg2[%c0_6, %c256] : memref<256x1024xbf16, #tpu.memory_space<vmem>>, vector<256x256xbf16>
    %cst_7 = arith.constant dense<0.000000e+00> : vector<48x256xf32>
    %12 = tpu.matmul %0, %11, %cst_7 {dimension_numbers = #tpu.dot_dimension_numbers<[1], [0], [0], [1], [0, 0, 1, 1], [], []>} : vector<48x256xbf16>, vector<256x256xbf16>, vector<48x256xf32> -> vector<48x256xf32>
    %c0_8 = arith.constant 0 : index
    %c256_9 = arith.constant 256 : index
    %13 = vector.load %arg3[%c0_8, %c256_9] : memref<1x1024xf32, #tpu.memory_space<vmem>>, vector<1x256xf32>
    %14 = vector.broadcast %13 : vector<1x256xf32> to vector<48x256xf32>
    %15 = arith.addf %12, %14 : vector<48x256xf32>
    %16 = arith.negf %15 : vector<48x256xf32>
    %17 = math.exp %16 : vector<48x256xf32>
    %cst_10 = arith.constant 1.000000e+00 : f32
    %18 = vector.broadcast %cst_10 : f32 to vector<48x256xf32>
    %19 = arith.addf %18, %17 : vector<48x256xf32>
    %20 = arith.divf %18, %19 : vector<48x256xf32>
    %c0_11 = arith.constant 0 : index
    %c512 = arith.constant 512 : index
    %21 = vector.load %arg2[%c0_11, %c512] : memref<256x1024xbf16, #tpu.memory_space<vmem>>, vector<256x256xbf16>
    %cst_12 = arith.constant dense<0.000000e+00> : vector<48x256xf32>
    %22 = tpu.matmul %0, %21, %cst_12 {dimension_numbers = #tpu.dot_dimension_numbers<[1], [0], [0], [1], [0, 0, 1, 1], [], []>} : vector<48x256xbf16>, vector<256x256xbf16>, vector<48x256xf32> -> vector<48x256xf32>
    %c0_13 = arith.constant 0 : index
    %c512_14 = arith.constant 512 : index
    %23 = vector.load %arg3[%c0_13, %c512_14] : memref<1x1024xf32, #tpu.memory_space<vmem>>, vector<1x256xf32>
    %24 = vector.broadcast %23 : vector<1x256xf32> to vector<48x256xf32>
    %25 = arith.addf %22, %24 : vector<48x256xf32>
    %26 = math.tanh %25 : vector<48x256xf32>
    %c0_15 = arith.constant 0 : index
    %c768 = arith.constant 768 : index
    %27 = vector.load %arg2[%c0_15, %c768] : memref<256x1024xbf16, #tpu.memory_space<vmem>>, vector<256x256xbf16>
    %cst_16 = arith.constant dense<0.000000e+00> : vector<48x256xf32>
    %28 = tpu.matmul %0, %27, %cst_16 {dimension_numbers = #tpu.dot_dimension_numbers<[1], [0], [0], [1], [0, 0, 1, 1], [], []>} : vector<48x256xbf16>, vector<256x256xbf16>, vector<48x256xf32> -> vector<48x256xf32>
    %c0_17 = arith.constant 0 : index
    %c768_18 = arith.constant 768 : index
    %29 = vector.load %arg3[%c0_17, %c768_18] : memref<1x1024xf32, #tpu.memory_space<vmem>>, vector<1x256xf32>
    %30 = vector.broadcast %29 : vector<1x256xf32> to vector<48x256xf32>
    %31 = arith.addf %28, %30 : vector<48x256xf32>
    %32 = arith.negf %31 : vector<48x256xf32>
    %33 = math.exp %32 : vector<48x256xf32>
    %cst_19 = arith.constant 1.000000e+00 : f32
    %34 = vector.broadcast %cst_19 : f32 to vector<48x256xf32>
    %35 = arith.addf %34, %33 : vector<48x256xf32>
    %36 = arith.divf %34, %35 : vector<48x256xf32>
    %c0_20 = arith.constant 0 : index
    %c0_21 = arith.constant 0 : index
    %37 = vector.load %arg4[%c0_20, %c0_21] : memref<1x256xf32, #tpu.memory_space<vmem>>, vector<1x256xf32>
    %38 = vector.broadcast %37 : vector<1x256xf32> to vector<48x256xf32>
    %39 = arith.mulf %38, %20 : vector<48x256xf32>
    %40 = math.exp %39 : vector<48x256xf32>
    %41 = arith.mulf %10, %26 : vector<48x256xf32>
    %42 = arith.mulf %41, %40 : vector<48x256xf32>
    %43 = math.tanh %42 : vector<48x256xf32>
    %44 = arith.mulf %36, %43 : vector<48x256xf32>
    %cst_22 = arith.constant dense<0.000000e+00> : vector<48xf32>
    %45 = vector.multi_reduction <add>, %44, %cst_22 [1] : vector<48x256xf32> to vector<48xf32>
    %46 = vector.shape_cast %45 : vector<48xf32> to vector<48x1xf32>
    %cst_23 = arith.constant 2.560000e+02 : f32
    %47 = vector.broadcast %cst_23 : f32 to vector<48x1xf32>
    %48 = arith.divf %46, %47 : vector<48x1xf32>
    %49 = vector.broadcast %48 : vector<48x1xf32> to vector<48x256xf32>
    %50 = arith.subf %44, %49 : vector<48x256xf32>
    %51 = arith.mulf %50, %50 : vector<48x256xf32>
    %cst_24 = arith.constant dense<0.000000e+00> : vector<48xf32>
    %52 = vector.multi_reduction <add>, %51, %cst_24 [1] : vector<48x256xf32> to vector<48xf32>
    %53 = vector.shape_cast %52 : vector<48xf32> to vector<48x1xf32>
    %cst_25 = arith.constant 2.560000e+02 : f32
    %54 = vector.broadcast %cst_25 : f32 to vector<48x1xf32>
    %55 = arith.divf %53, %54 : vector<48x1xf32>
    %cst_26 = arith.constant 9.99999974E-6 : f32
    %56 = vector.broadcast %cst_26 : f32 to vector<48x1xf32>
    %57 = arith.addf %55, %56 : vector<48x1xf32>
    %58 = math.rsqrt %57 : vector<48x1xf32>
    %59 = vector.broadcast %58 : vector<48x1xf32> to vector<48x256xf32>
    %60 = arith.mulf %50, %59 : vector<48x256xf32>
    %c0_27 = arith.constant 0 : index
    %c0_28 = arith.constant 0 : index
    %61 = vector.load %arg5[%c0_27, %c0_28] : memref<1x256xf32, #tpu.memory_space<vmem>>, vector<1x256xf32>
    %62 = vector.broadcast %61 : vector<1x256xf32> to vector<48x256xf32>
    %63 = arith.mulf %60, %62 : vector<48x256xf32>
    %c0_29 = arith.constant 0 : index
    %c0_30 = arith.constant 0 : index
    %64 = vector.load %arg6[%c0_29, %c0_30] : memref<1x256xf32, #tpu.memory_space<vmem>>, vector<1x256xf32>
    %65 = vector.broadcast %64 : vector<1x256xf32> to vector<48x256xf32>
    %66 = arith.addf %63, %65 : vector<48x256xf32>
    %c0_31 = arith.constant 0 : index
    %c0_32 = arith.constant 0 : index
    %67 = vector.load %arg7[%c0_31, %c0_32] : memref<48x256xf32, #tpu.memory_space<vmem>>, vector<48x256xf32>
    tpu.vector_store %arg7[%c0_31, %c0_32], %66 {strides = array<i32>} : memref<48x256xf32, #tpu.memory_space<vmem>>, vector<48x256xf32>,
    return
  }
  func.func @transform_0(%arg0: i32) -> (i32, i32) {
    %c0_i32 = arith.constant 0 : i32
    %c0_i32_0 = arith.constant 0 : i32
    return %arg0, %c0_i32 : i32, i32
  }
  func.func @transform_1(%arg0: i32) -> (i32, i32) {
    %c0_i32 = arith.constant 0 : i32
    %c0_i32_0 = arith.constant 0 : i32
    %c0_i32_1 = arith.constant 0 : i32
    return %c0_i32, %c0_i32_0 : i32, i32
  }
  func.func @transform_2(%arg0: i32) -> (i32, i32) {
    %c0_i32 = arith.constant 0 : i32
    %c0_i32_0 = arith.constant 0 : i32
    %c0_i32_1 = arith.constant 0 : i32
    return %c0_i32, %c0_i32_0 : i32, i32
  }
  func.func @transform_3(%arg0: i32) -> (i32, i32) {
    %c0_i32 = arith.constant 0 : i32
    %c0_i32_0 = arith.constant 0 : i32
    %c0_i32_1 = arith.constant 0 : i32
    return %c0_i32, %c0_i32_0 : i32, i32
  }
  func.func @transform_4(%arg0: i32) -> (i32, i32) {
    %c0_i32 = arith.constant 0 : i32
    %c0_i32_0 = arith.constant 0 : i32
    %c0_i32_1 = arith.constant 0 : i32
    return %c0_i32, %c0_i32_0 : i32, i32
  }
  func.func @transform_5(%arg0: i32) -> (i32, i32) {
    %c0_i32 = arith.constant 0 : i32
    %c0_i32_0 = arith.constant 0 : i32
    %c0_i32_1 = arith.constant 0 : i32
    return %c0_i32, %c0_i32_0 : i32, i32
  }
  func.func @transform_6(%arg0: i32) -> (i32, i32) {
    %c0_i32 = arith.constant 0 : i32
    %c0_i32_0 = arith.constant 0 : i32
    return %arg0, %c0_i32 : i32, i32
  }
}

</mosaic_0001>

<bundles_post_ra>
// kernel: xlstm_cell.1
= control target key start
LH: loop header
LB: loop body
LE: loop exit
PB: predicated region body
PF: predicated region fallthrough
CT: control target
= control target key end

     0   :  { %11 = vsyncpa [#allocation3], 0  ;;  %s2501_s0 = inlined_call_operand.vmem [shape: bf16[48,256], index: 0, kind: input, shape index: {}]   ;;  %s2502_s1 = inlined_call_operand.hbm [shape: bf16[256,1024], index: 1, kind: input, shape index: {}]   ;;  %s2503_s2 = inlined_call_operand.vmem [shape: f32[1,1024], index: 2, kind: input, shape index: {}]   ;;  %s2504_s3 = inlined_call_operand.vmem [shape: f32[1,256], index: 3, kind: input, shape index: {}]   ;;  %s2505_s4 = inlined_call_operand.vmem [shape: f32[1,256], index: 4, kind: input, shape index: {}]   ;;  %s2506_s5 = inlined_call_operand.vmem [shape: f32[1,256], index: 5, kind: input, shape index: {}]   ;;  %s2507_s6 = inlined_call_operand.hbm [shape: f32[48,256], index: 6, kind: output, shape index: {}]  }
   0x1   :  { %12 = vsyncpa [#allocation4], 0  ;;  %s2101_s21 = smov [#allocation2]   ;;  %s2053_s25 = scalar_lea.hbm %s2502_s1, 16384 }
   0x2   :  { %s20_s22 = sshll.u32 %s2101_s21, 4  ;;  %p2054_p0 = scmp.ne.s32.totalorder %s2502_s1, %s2053_s25  ;;  %s21_s22 = int_to_ptr.vmem [resolvable:$true] %s20_s22 }
   0x3   :  { %p2057_p1 = scmp.lt.u32.totalorder %s2053_s25, %s2502_s1 }
   0x5   :  { %p2059_p2 = pnand %p2057_p1, %p2054_p0 }
   0x7   :  { %2062 = shalt.err (!%p2059_p2)
}
   0x8   :  { %s2063_s30 = scalar_lea.vmem %s21_s22, 16384  ;;  %p2068_p4 = scmp.lt.s32.totalorder %s21_s22, %s21_s22 }
   0x9   :  { %p2064_p3 = scmp.ne.s32.totalorder %s21_s22, %s2063_s30  ;;  %p2069_p5 = scmp.lt.s32.totalorder %s2063_s30, %s2063_s30 }
   0xb   :  { %p2070_p6 = por %p2069_p5, %p2068_p4 }
   0xd   :  { %p2071_p7 = pnand %p2070_p6, %p2064_p3 }
   0xf   :  { %2074 = shalt.err (!%p2071_p7)
}
  0x10   :  { %s2102_s7 = smov 512   ;;  %s2103_s8 = smov 32  }
  0x11   :  { %26 = dma.hbm_to_vmem [thread:$0]  %s2502_s1, 16384, %s21_s22, [#allocation3], %s2102_s7, %s2102_s7, %s2103_s8  }
  0x12   :  { %2097 = dma.done.wait [#allocation3], 16384  }
  0x13   :  { %2098 = vsyncadd [#allocation3], 4294950912  ;;  %v44_v0 = vld [vmem:[#allocation2] sm:$0xff]  ;;  %v413_v2 = vld [vmem:[#allocation2 + $0x8] sm:$0xff] }
  0x14   :  { %v45_v1 = vld [vmem:[#allocation2 + $0x20] sm:$0xff]  ;;  %v414_v4 = vld [vmem:[#allocation2 + $0x28] sm:$0xff] }
  0x15   :  { %v1647_v3 = vcombine.high %v44_v0, %v45_v1  ;;  %v1646_v5 = vcombine.low %v44_v0, %v45_v1  ;;  %v46_v6 = vld [vmem:[#allocation2 + $0x40] sm:$0xff]  ;;  %v1691_v8 = vcombine.high %v413_v2, %v414_v4  ;;  %v1690_v9 = vcombine.low %v413_v2, %v414_v4  ;;  %v415_v11 = vld [vmem:[#allocation2 + $0x48] sm:$0xff] }
  0x16   :  { %v47_v7 = vld [vmem:[#allocation2 + $0x60] sm:$0xff]  ;;  %v416_v12 = vld [vmem:[#allocation2 + $0x68] sm:$0xff] }
  0x17   :  { %v1649_v10 = vcombine.high %v46_v6, %v47_v7  ;;  %v48_v13 = vld [vmem:[#allocation2 + $0x80] sm:$0xff]  ;;  %278 = vmatprep.subr.bf16.mxu0 %v1647_v3  ;;  %v1693_v14 = vcombine.high %v415_v11, %v416_v12  ;;  %v417_v16 = vld [vmem:[#allocation2 + $0x88] sm:$0xff]  ;;  %617 = vmatprep.subr.bf16.mxu1 %v1691_v8  ;;  %v1648_v18 = vcombine.low %v46_v6, %v47_v7 }
  0x18   :  { %v49_v15 = vld [vmem:[#allocation2 + $0xa0] sm:$0xff]  ;;  %v418_v17 = vld [vmem:[#allocation2 + $0xa8] sm:$0xff]  ;;  %279 = vmatpush1.bf16.msra.mxu0 %v1646_v5  ;;  %618 = vmatpush1.bf16.msra.mxu1 %v1690_v9  ;;  %v1692_v19 = vcombine.low %v415_v11, %v416_v12 }
  0x19   :  { %280 = vmatprep.subr.bf16.mxu0 %v1649_v10  ;;  %v1651_v20 = vcombine.high %v48_v13, %v49_v15  ;;  %619 = vmatprep.subr.bf16.mxu1 %v1693_v14  ;;  %v1695_v21 = vcombine.high %v417_v16, %v418_v17  ;;  %v50_v22 = vld [vmem:[#allocation2 + $0xc0] sm:$0xff]  ;;  %v419_v24 = vld [vmem:[#allocation2 + $0xc8] sm:$0xff]  ;;  %v1650_v26 = vcombine.low %v48_v13, %v49_v15 }
  0x1a   :  { %v51_v23 = vld [vmem:[#allocation2 + $0xe0] sm:$0xff]  ;;  %v420_v25 = vld [vmem:[#allocation2 + $0xe8] sm:$0xff]  ;;  %v1694_v27 = vcombine.low %v417_v16, %v418_v17 }
  0x1b   :  { %v1653_v28 = vcombine.high %v50_v22, %v51_v23  ;;  %v1697_v29 = vcombine.high %v419_v24, %v420_v25  ;;  %v52_v30 = vld [vmem:[#allocation2 + $0x100] sm:$0xff]  ;;  %v421_v32 = vld [vmem:[#allocation2 + $0x108] sm:$0xff]  ;;  %v1652_v34 = vcombine.low %v50_v22, %v51_v23  ;;  %v1696_v35 = vcombine.low %v419_v24, %v420_v25 }
  0x1c   :  { %281 = vmatpush1.bf16.msra.mxu0 %v1648_v18  ;;  %620 = vmatpush1.bf16.msra.mxu1 %v1692_v19  ;;  %v53_v31 = vld [vmem:[#allocation2 + $0x120] sm:$0xff]  ;;  %v422_v33 = vld [vmem:[#allocation2 + $0x128] sm:$0xff] }
  0x1d   :  { %282 = vmatprep.subr.bf16.mxu0 %v1651_v20  ;;  %621 = vmatprep.subr.bf16.mxu1 %v1695_v21  ;;  %v1655_v36 = vcombine.high %v52_v30, %v53_v31  ;;  %v1699_v37 = vcombine.high %v421_v32, %v422_v33  ;;  %v54_v38 = vld [vmem:[#allocation2 + $0x140] sm:$0xff]  ;;  %v423_v40 = vld [vmem:[#allocation2 + $0x148] sm:$0xff]  ;;  %v1654_v42 = vcombine.low %v52_v30, %v53_v31 }
  0x1e   :  { %v55_v39 = vld [vmem:[#allocation2 + $0x160] sm:$0xff]  ;;  %v424_v41 = vld [vmem:[#allocation2 + $0x168] sm:$0xff]  ;;  %v1698_v43 = vcombine.low %v421_v32, %v422_v33 }
  0x1f   :  { %v1657_v44 = vcombine.high %v54_v38, %v55_v39  ;;  %v1701_v45 = vcombine.high %v423_v40, %v424_v41  ;;  %v56_v46 = vld [vmem:[#allocation2 + $0x180] sm:$0xff]  ;;  %v425_v48 = vld [vmem:[#allocation2 + $0x188] sm:$0xff]  ;;  %v1656_v50 = vcombine.low %v54_v38, %v55_v39  ;;  %v1700_v51 = vcombine.low %v423_v40, %v424_v41 }
  0x20   :  { %283 = vmatpush1.bf16.msra.mxu0 %v1650_v26  ;;  %622 = vmatpush1.bf16.msra.mxu1 %v1694_v27  ;;  %v57_v47 = vld [vmem:[#allocation2 + $0x1a0] sm:$0xff]  ;;  %v426_v49 = vld [vmem:[#allocation2 + $0x1a8] sm:$0xff] }
  0x21   :  { %284 = vmatprep.subr.bf16.mxu0 %v1653_v28  ;;  %623 = vmatprep.subr.bf16.mxu1 %v1697_v29  ;;  %v1659_v52 = vcombine.high %v56_v46, %v57_v47  ;;  %v1703_v53 = vcombine.high %v425_v48, %v426_v49  ;;  %v58_v54 = vld [vmem:[#allocation2 + $0x1c0] sm:$0xff]  ;;  %v427_v57 = vld [vmem:[#allocation2 + $0x1c8] sm:$0xff]  ;;  %v1658_v59 = vcombine.low %v56_v46, %v57_v47 }
  0x22   :  { %v59_v55 = vld [vmem:[#allocation2 + $0x1e0] sm:$0xff]  ;;  %v428_v58 = vld [vmem:[#allocation2 + $0x1e8] sm:$0xff]  ;;  %v1702_v60 = vcombine.low %v425_v48, %v426_v49 }
  0x23   :  { %v2157_v56 = vld [vmem:[%s2501_s0 + $0x4] ss:$8 sps:$4 sm:$0xff]   ;;  %v1661_v61 = vcombine.high %v58_v54, %v59_v55  ;;  %v1705_v62 = vcombine.high %v427_v57, %v428_v58  ;;  %v1660_v3 = vcombine.low %v58_v54, %v59_v55  ;;  %v1704_v4 = vcombine.low %v427_v57, %v428_v58 }
  0x24   :  { %285 = vmatpush1.bf16.msra.mxu0 %v1652_v34  ;;  %624 = vmatpush1.bf16.msra.mxu1 %v1696_v35  ;;  %v60_v63 = vld [vmem:[#allocation2 + $0x200] sm:$0xff]  ;;  %v429_v1 = vld [vmem:[#allocation2 + $0x208] sm:$0xff] }
  0x25   :  { %286 = vmatprep.subr.bf16.mxu0 %v1655_v36  ;;  %625 = vmatprep.subr.bf16.mxu1 %v1699_v37  ;;  %v61_v0 = vld [vmem:[#allocation2 + $0x220] sm:$0xff]  ;;  %v430_v2 = vld [vmem:[#allocation2 + $0x228] sm:$0xff] }
  0x26   :  { %310 = vmatprep.mubr.bf16.mxu0 %v2157_v56  ;;  %649 = vmatprep.mubr.bf16.mxu1 %v2157_v56  ;;  %v1663_v5 = vcombine.high %v60_v63, %v61_v0  ;;  %v1707_v6 = vcombine.high %v429_v1, %v430_v2  ;;  %v62_v7 = vld [vmem:[#allocation2 + $0x240] sm:$0xff]  ;;  %v431_v9 = vld [vmem:[#allocation2 + $0x248] sm:$0xff]  ;;  %v1662_v11 = vcombine.low %v60_v63, %v61_v0  ;;  %v752_v0 = vld [vmem:[#allocation2 + $0x10] sm:$0xff] }
  0x27   :  { %v63_v8 = vld [vmem:[#allocation2 + $0x260] sm:$0xff]  ;;  %v432_v10 = vld [vmem:[#allocation2 + $0x268] sm:$0xff]  ;;  %v1706_v12 = vcombine.low %v429_v1, %v430_v2  ;;  %v753_v1 = vld [vmem:[#allocation2 + $0x30] sm:$0xff] }
  0x28   :  { %287 = vmatpush1.bf16.msra.mxu0 %v1654_v42  ;;  %626 = vmatpush1.bf16.msra.mxu1 %v1698_v43  ;;  %v1665_v13 = vcombine.high %v62_v7, %v63_v8  ;;  %v1709_v14 = vcombine.high %v431_v9, %v432_v10  ;;  %v64_v15 = vld [vmem:[#allocation2 + $0x280] sm:$0xff]  ;;  %v433_v17 = vld [vmem:[#allocation2 + $0x288] sm:$0xff]  ;;  %v1664_v19 = vcombine.low %v62_v7, %v63_v8  ;;  %v1031_v2 = vld [vmem:[#allocation2 + $0x18] sm:$0xff] }
  0x29   :  { %288 = vmatprep.subr.bf16.mxu0 %v1657_v44  ;;  %627 = vmatprep.subr.bf16.mxu1 %v1701_v45  ;;  %v65_v16 = vld [vmem:[#allocation2 + $0x2a0] sm:$0xff]  ;;  %v434_v18 = vld [vmem:[#allocation2 + $0x2a8] sm:$0xff]  ;;  %v1708_v20 = vcombine.low %v431_v9, %v432_v10  ;;  %v754_v8 = vld [vmem:[#allocation2 + $0x50] sm:$0xff] }
  0x2a   :  { %v1667_v21 = vcombine.high %v64_v15, %v65_v16  ;;  %v1711_v22 = vcombine.high %v433_v17, %v434_v18  ;;  %v66_v23 = vld [vmem:[#allocation2 + $0x2c0] sm:$0xff]  ;;  %v435_v25 = vld [vmem:[#allocation2 + $0x2c8] sm:$0xff]  ;;  %v1666_v27 = vcombine.low %v64_v15, %v65_v16  ;;  %v1710_v28 = vcombine.low %v433_v17, %v434_v18  ;;  %v755_v9 = vld [vmem:[#allocation2 + $0x70] sm:$0xff] }
  0x2b   :  { %v67_v24 = vld [vmem:[#allocation2 + $0x2e0] sm:$0xff]  ;;  %v436_v26 = vld [vmem:[#allocation2 + $0x2e8] sm:$0xff]  ;;  %v1737_v15 = vcombine.high %v754_v8, %v755_v9  ;;  %v756_v17 = vld [vmem:[#allocation2 + $0x90] sm:$0xff] }
  0x2c   :  { %289 = vmatpush1.bf16.msra.mxu0 %v1656_v50  ;;  %628 = vmatpush1.bf16.msra.mxu1 %v1700_v51  ;;  %v1669_v29 = vcombine.high %v66_v23, %v67_v24  ;;  %v1713_v30 = vcombine.high %v435_v25, %v436_v26  ;;  %v68_v31 = vld [vmem:[#allocation2 + $0x300] sm:$0xff]  ;;  %v437_v33 = vld [vmem:[#allocation2 + $0x308] sm:$0xff]  ;;  %v1668_v35 = vcombine.low %v66_v23, %v67_v24  ;;  %v757_v18 = vld [vmem:[#allocation2 + $0xb0] sm:$0xff] }
  0x2d   :  { %290 = vmatprep.subr.bf16.mxu0 %v1659_v52  ;;  %629 = vmatprep.subr.bf16.mxu1 %v1703_v53  ;;  %v69_v32 = vld [vmem:[#allocation2 + $0x320] sm:$0xff]  ;;  %v438_v34 = vld [vmem:[#allocation2 + $0x328] sm:$0xff]  ;;  %v1712_v36 = vcombine.low %v435_v25, %v436_v26  ;;  %v1739_v24 = vcombine.high %v756_v17, %v757_v18  ;;  %v758_v26 = vld [vmem:[#allocation2 + $0xd0] sm:$0xff] }
  0x2e   :  { %v1671_v37 = vcombine.high %v68_v31, %v69_v32  ;;  %v1715_v38 = vcombine.high %v437_v33, %v438_v34  ;;  %v70_v39 = vld [vmem:[#allocation2 + $0x340] sm:$0xff]  ;;  %v439_v41 = vld [vmem:[#allocation2 + $0x348] sm:$0xff]  ;;  %v1670_v43 = vcombine.low %v68_v31, %v69_v32  ;;  %v1714_v44 = vcombine.low %v437_v33, %v438_v34  ;;  %v2178_v31 = vld [vmem:[%s2501_s0 + $0x10] ss:$8 sps:$4 sm:$0xff]  }
  0x2f   :  { %v71_v40 = vld [vmem:[#allocation2 + $0x360] sm:$0xff]  ;;  %v440_v42 = vld [vmem:[#allocation2 + $0x368] sm:$0xff] }
  0x30   :  { %291 = vmatpush1.bf16.msra.mxu0 %v1658_v59  ;;  %630 = vmatpush1.bf16.msra.mxu1 %v1702_v60  ;;  %v1673_v45 = vcombine.high %v70_v39, %v71_v40  ;;  %v1717_v46 = vcombine.high %v439_v41, %v440_v42  ;;  %v72_v47 = vld [vmem:[#allocation2 + $0x380] sm:$0xff]  ;;  %v441_v49 = vld [vmem:[#allocation2 + $0x388] sm:$0xff]  ;;  %v1672_v51 = vcombine.low %v70_v39, %v71_v40  ;;  %v1040_v39 = vld [vmem:[#allocation2 + $0x138] sm:$0xff] }
  0x31   :  { %292 = vmatprep.subr.bf16.mxu0 %v1661_v61  ;;  %631 = vmatprep.subr.bf16.mxu1 %v1705_v62  ;;  %v73_v48 = vld [vmem:[#allocation2 + $0x3a0] sm:$0xff]  ;;  %v442_v50 = vld [vmem:[#allocation2 + $0x3a8] sm:$0xff]  ;;  %v1716_v52 = vcombine.low %v439_v41, %v440_v42 }
  0x32   :  { %v1675_v53 = vcombine.high %v72_v47, %v73_v48  ;;  %v1719_v54 = vcombine.high %v441_v49, %v442_v50  ;;  %v74_v55 = vld [vmem:[#allocation2 + $0x3c0] sm:$0xff]  ;;  %v443_v58 = vld [vmem:[#allocation2 + $0x3c8] sm:$0xff]  ;;  %v1674_v60 = vcombine.low %v72_v47, %v73_v48  ;;  %v1718_v61 = vcombine.low %v441_v49, %v442_v50  ;;  %v1042_v47 = vld [vmem:[#allocation2 + $0x178] sm:$0xff] }
  0x33   :  { %v75_v57 = vld [vmem:[#allocation2 + $0x3e0] sm:$0xff]  ;;  %v444_v59 = vld [vmem:[#allocation2 + $0x3e8] sm:$0xff] }
  0x34   :  { %293 = vmatpush1.bf16.msra.mxu0 %v1660_v3  ;;  %632 = vmatpush1.bf16.msra.mxu1 %v1704_v4  ;;  %v1677_v62 = vcombine.high %v74_v55, %v75_v57  ;;  %v1721_v63 = vcombine.high %v443_v58, %v444_v59  ;;  %v1032_v3 = vld [vmem:[#allocation2 + $0x38] sm:$0xff]  ;;  %v1676_v4 = vcombine.low %v74_v55, %v75_v57  ;;  %v2164_v10 = vld [vmem:[%s2501_s0] ss:$8 sps:$4 sm:$0xff]  }
  0x35   :  { %294 = vmatprep.subr.bf16.mxu0 %v1663_v5  ;;  %633 = vmatprep.subr.bf16.mxu1 %v1707_v6  ;;  %v1720_v5 = vcombine.low %v443_v58, %v444_v59  ;;  %v1735_v6 = vcombine.high %v752_v0, %v753_v1  ;;  %v1767_v7 = vcombine.high %v1031_v2, %v1032_v3  ;;  %v2192_v49 = vld [vmem:[%s2501_s0 + $0x20] ss:$8 sps:$4 sm:$0xff]   ;;  %v1043_v55 = vld [vmem:[#allocation2 + $0x198] sm:$0xff] }
  0x36   :  { %v1044_v57 = vld [vmem:[#allocation2 + $0x1b8] sm:$0xff] }
  0x38   :  { %295 = vmatpush1.bf16.msra.mxu0 %v1662_v11  ;;  %634 = vmatpush1.bf16.msra.mxu1 %v1706_v12  ;;  %v1033_v11 = vld [vmem:[#allocation2 + $0x58] sm:$0xff] }
  0x39   :  { %296 = vmatprep.subr.bf16.mxu0 %v1665_v13  ;;  %635 = vmatprep.subr.bf16.mxu1 %v1709_v14  ;;  %v1034_v12 = vld [vmem:[#allocation2 + $0x78] sm:$0xff]  ;;  %v1734_v13 = vcombine.low %v752_v0, %v753_v1  ;;  %v1766_v14 = vcombine.low %v1031_v2, %v1032_v3  ;;  %v1778_v3 = vcombine.low %v1043_v55, %v1044_v57 }
  0x3a   :  { %v1769_v16 = vcombine.high %v1033_v11, %v1034_v12  ;;  %v1768_v23 = vcombine.low %v1033_v11, %v1034_v12  ;;  %v1045_v0 = vld [vmem:[#allocation2 + $0x1d8] sm:$0xff] }
  0x3b   :  { %v1046_v1 = vld [vmem:[#allocation2 + $0x1f8] sm:$0xff] }
  0x3c   :  { %297 = vmatpush1.bf16.msra.mxu0 %v1664_v19  ;;  %636 = vmatpush1.bf16.msra.mxu1 %v1708_v20  ;;  %v2169_v19 = vld [vmem:[%s2501_s0 + $0x14] ss:$8 sps:$4 sm:$0xff]   ;;  %v1780_v12 = vcombine.low %v1045_v0, %v1046_v1 }
  0x3d   :  { %298 = vmatprep.subr.bf16.mxu0 %v1667_v21  ;;  %637 = vmatprep.subr.bf16.mxu1 %v1711_v22  ;;  %v1035_v20 = vld [vmem:[#allocation2 + $0x98] sm:$0xff]  ;;  %v1736_v22 = vcombine.low %v754_v8, %v755_v9 }
  0x3e   :  { %v1036_v21 = vld [vmem:[#allocation2 + $0xb8] sm:$0xff] }
  0x3f   :  { %v1771_v25 = vcombine.high %v1035_v20, %v1036_v21  ;;  %v1770_v32 = vcombine.low %v1035_v20, %v1036_v21  ;;  %v1047_v8 = vld [vmem:[#allocation2 + $0x218] sm:$0xff] }
  0x40   :  { %299 = vmatpush1.bf16.msra.mxu0 %v1666_v27  ;;  %638 = vmatpush1.bf16.msra.mxu1 %v1710_v28  ;;  %v759_v27 = vld [vmem:[#allocation2 + $0xf0] sm:$0xff]  ;;  %v1037_v28 = vld [vmem:[#allocation2 + $0xd8] sm:$0xff] }
  0x41   :  { %300 = vmatprep.subr.bf16.mxu0 %v1669_v29  ;;  %639 = vmatprep.subr.bf16.mxu1 %v1713_v30  ;;  %v1038_v29 = vld [vmem:[#allocation2 + $0xf8] sm:$0xff]  ;;  %v1738_v30 = vcombine.low %v756_v17, %v757_v18  ;;  %v1741_v33 = vcombine.high %v758_v26, %v759_v27  ;;  %v1740_v40 = vcombine.low %v758_v26, %v759_v27 }
  0x42   :  { %v1773_v34 = vcombine.high %v1037_v28, %v1038_v29  ;;  %v1772_v41 = vcombine.low %v1037_v28, %v1038_v29  ;;  %v1048_v9 = vld [vmem:[#allocation2 + $0x238] sm:$0xff] }
  0x43   :  { %v1050_v17 = vld [vmem:[#allocation2 + $0x278] sm:$0xff]  ;;  %v1782_v20 = vcombine.low %v1047_v8, %v1048_v9 }
  0x44   :  { %301 = vmatpush1.bf16.msra.mxu0 %v1668_v35  ;;  %640 = vmatpush1.bf16.msra.mxu1 %v1712_v36  ;;  %v760_v35 = vld [vmem:[#allocation2 + $0x110] sm:$0xff]  ;;  %v1052_v26 = vld [vmem:[#allocation2 + $0x2b8] sm:$0xff] }
  0x45   :  { %302 = vmatprep.subr.bf16.mxu0 %v1671_v37  ;;  %641 = vmatprep.subr.bf16.mxu1 %v1715_v38  ;;  %v761_v36 = vld [vmem:[#allocation2 + $0x130] sm:$0xff]  ;;  %v2183_v37 = vld [vmem:[%s2501_s0 + $0x24] ss:$8 sps:$4 sm:$0xff]   ;;  %v1039_v38 = vld [vmem:[#allocation2 + $0x118] sm:$0xff] }
  0x46   :  { %v1743_v42 = vcombine.high %v760_v35, %v761_v36  ;;  %v1742_v48 = vcombine.low %v760_v35, %v761_v36  ;;  %v1774_v50 = vcombine.low %v1039_v38, %v1040_v39  ;;  %v1054_v35 = vld [vmem:[#allocation2 + $0x2f8] sm:$0xff] }
  0x48   :  { %303 = vmatpush1.bf16.msra.mxu0 %v1670_v43  ;;  %642 = vmatpush1.bf16.msra.mxu1 %v1714_v44  ;;  %v1775_v43 = vcombine.high %v1039_v38, %v1040_v39  ;;  %v762_v44 = vld [vmem:[#allocation2 + $0x150] sm:$0xff] }
  0x49   :  { %304 = vmatprep.subr.bf16.mxu0 %v1673_v45  ;;  %643 = vmatprep.subr.bf16.mxu1 %v1717_v46  ;;  %v763_v45 = vld [vmem:[#allocation2 + $0x170] sm:$0xff]  ;;  %v1041_v46 = vld [vmem:[#allocation2 + $0x158] sm:$0xff] }
  0x4a   :  { %v1744_v58 = vcombine.low %v762_v44, %v763_v45  ;;  %v1776_v59 = vcombine.low %v1041_v46, %v1042_v47 }
  0x4c   :  { %305 = vmatpush1.bf16.msra.mxu0 %v1672_v51  ;;  %644 = vmatpush1.bf16.msra.mxu1 %v1716_v52  ;;  %v1745_v51 = vcombine.high %v762_v44, %v763_v45  ;;  %v1777_v52 = vcombine.high %v1041_v46, %v1042_v47  ;;  %v1056_v44 = vld [vmem:[#allocation2 + $0x338] sm:$0xff] }
  0x4d   :  { %306 = vmatprep.subr.bf16.mxu0 %v1675_v53  ;;  %645 = vmatprep.subr.bf16.mxu1 %v1719_v54  ;;  %v764_v53 = vld [vmem:[#allocation2 + $0x190] sm:$0xff] }
  0x4e   :  { %v765_v54 = vld [vmem:[#allocation2 + $0x1b0] sm:$0xff] }
  0x4f   :  { %v1746_v2 = vcombine.low %v764_v53, %v765_v54 }
  0x50   :  { %307 = vmatpush1.bf16.msra.mxu0 %v1674_v60  ;;  %646 = vmatpush1.bf16.msra.mxu1 %v1718_v61  ;;  %v1747_v60 = vcombine.high %v764_v53, %v765_v54  ;;  %v1779_v61 = vcombine.high %v1043_v55, %v1044_v57  ;;  %v1058_v53 = vld [vmem:[#allocation2 + $0x378] sm:$0xff] }
  0x51   :  { %308 = vmatprep.subr.bf16.mxu0 %v1677_v62  ;;  %647 = vmatprep.subr.bf16.mxu1 %v1721_v63  ;;  %v766_v62 = vld [vmem:[#allocation2 + $0x1d0] sm:$0xff] }
  0x52   :  { %v767_v63 = vld [vmem:[#allocation2 + $0x1f0] sm:$0xff] }
  0x53   :  { %v1748_v11 = vcombine.low %v766_v62, %v767_v63 }
  0x54   :  { %309 = vmatpush1.bf16.msra.mxu0 %v1676_v4  ;;  %648 = vmatpush1.bf16.msra.mxu1 %v1720_v5  ;;  %v1749_v4 = vcombine.high %v766_v62, %v767_v63  ;;  %v1781_v5 = vcombine.high %v1045_v0, %v1046_v1  ;;  %v1060_v62 = vld [vmem:[#allocation2 + $0x3b8] sm:$0xff] }
  0x55   :  { %956 = vmatprep.subr.bf16.mxu0 %v1735_v6  ;;  %1235 = vmatprep.subr.bf16.mxu1 %v1767_v7  ;;  %v768_v6 = vld [vmem:[#allocation2 + $0x210] sm:$0xff] }
  0x56   :  { %v769_v7 = vld [vmem:[#allocation2 + $0x230] sm:$0xff] }
  0x57   :  { %311 = vmatmul.mubr.bf16.vlgmr.msra.gmra.mrb[0].mxu0 %v2164_v10  ;;  %650 = vmatmul.mubr.bf16.vlgmr.msra.gmra.mrb[0].mxu1 %v2164_v10  ;;  %v1750_v18 = vcombine.low %v768_v6, %v769_v7 }
  0x58   :  { %957 = vmatpush1.bf16.msra.mxu0 %v1734_v13  ;;  %1236 = vmatpush1.bf16.msra.mxu1 %v1766_v14  ;;  %v1751_v13 = vcombine.high %v768_v6, %v769_v7  ;;  %v770_v14 = vld [vmem:[#allocation2 + $0x250] sm:$0xff]  ;;  %v1062_v6 = vld [vmem:[#allocation2 + $0x3f8] sm:$0xff] }
  0x59   :  { %958 = vmatprep.subr.bf16.mxu0 %v1737_v15  ;;  %1237 = vmatprep.subr.bf16.mxu1 %v1769_v16  ;;  %v771_v15 = vld [vmem:[#allocation2 + $0x270] sm:$0xff]  ;;  %v1049_v16 = vld [vmem:[#allocation2 + $0x258] sm:$0xff] }
  0x5a   :  { %659 = vmatprep.mubr.bf16.mxu1 %v2169_v19  ;;  %320 = vmatprep.mubr.bf16.mxu0 %v2169_v19  ;;  %v1753_v21 = vcombine.high %v770_v14, %v771_v15  ;;  %v1752_v27 = vcombine.low %v770_v14, %v771_v15  ;;  %v1784_v28 = vcombine.low %v1049_v16, %v1050_v17 }
  0x5c   :  { %959 = vmatpush1.bf16.msra.mxu0 %v1736_v22  ;;  %1238 = vmatpush1.bf16.msra.mxu1 %v1768_v23  ;;  %v1785_v22 = vcombine.high %v1049_v16, %v1050_v17  ;;  %v772_v23 = vld [vmem:[#allocation2 + $0x290] sm:$0xff] }
  0x5d   :  { %960 = vmatprep.subr.bf16.mxu0 %v1739_v24  ;;  %1239 = vmatprep.subr.bf16.mxu1 %v1771_v25  ;;  %v773_v24 = vld [vmem:[#allocation2 + $0x2b0] sm:$0xff]  ;;  %v1051_v25 = vld [vmem:[#allocation2 + $0x298] sm:$0xff] }
  0x5e   :  { %v1755_v29 = vcombine.high %v772_v23, %v773_v24  ;;  %v1754_v36 = vcombine.low %v772_v23, %v773_v24  ;;  %v1786_v38 = vcombine.low %v1051_v25, %v1052_v26 }
  0x5f   :  { %321 = vmatmul.mubr.bf16.gmra.mrb[4].mxu0 %v2178_v31  ;;  %660 = vmatmul.mubr.bf16.gmra.mrb[4].mxu1 %v2178_v31 }
  0x60   :  { %961 = vmatpush1.bf16.msra.mxu0 %v1738_v30  ;;  %1240 = vmatpush1.bf16.msra.mxu1 %v1770_v32  ;;  %v1787_v30 = vcombine.high %v1051_v25, %v1052_v26  ;;  %v774_v32 = vld [vmem:[#allocation2 + $0x2d0] sm:$0xff] }
  0x61   :  { %962 = vmatprep.subr.bf16.mxu0 %v1741_v33  ;;  %1241 = vmatprep.subr.bf16.mxu1 %v1773_v34  ;;  %v775_v33 = vld [vmem:[#allocation2 + $0x2f0] sm:$0xff]  ;;  %v1053_v34 = vld [vmem:[#allocation2 + $0x2d8] sm:$0xff] }
  0x62   :  { %669 = vmatprep.mubr.bf16.mxu1 %v2183_v37  ;;  %330 = vmatprep.mubr.bf16.mxu0 %v2183_v37  ;;  %v1757_v39 = vcombine.high %v774_v32, %v775_v33  ;;  %v1756_v45 = vcombine.low %v774_v32, %v775_v33  ;;  %v1788_v46 = vcombine.low %v1053_v34, %v1054_v35 }
  0x64   :  { %963 = vmatpush1.bf16.msra.mxu0 %v1740_v40  ;;  %1242 = vmatpush1.bf16.msra.mxu1 %v1772_v41  ;;  %v1789_v40 = vcombine.high %v1053_v34, %v1054_v35  ;;  %v776_v41 = vld [vmem:[#allocation2 + $0x310] sm:$0xff] }
  0x65   :  { %964 = vmatprep.subr.bf16.mxu0 %v1743_v42  ;;  %1243 = vmatprep.subr.bf16.mxu1 %v1775_v43  ;;  %v777_v42 = vld [vmem:[#allocation2 + $0x330] sm:$0xff]  ;;  %v1055_v43 = vld [vmem:[#allocation2 + $0x318] sm:$0xff] }
  0x66   :  { %v1759_v47 = vcombine.high %v776_v41, %v777_v42  ;;  %v1758_v54 = vcombine.low %v776_v41, %v777_v42  ;;  %v1790_v55 = vcombine.low %v1055_v43, %v1056_v44 }
  0x67   :  { %331 = vmatmul.mubr.bf16.gmra.mrb[8].mxu0 %v2192_v49  ;;  %670 = vmatmul.mubr.bf16.gmra.mrb[8].mxu1 %v2192_v49 }
  0x68   :  { %965 = vmatpush1.bf16.msra.mxu0 %v1742_v48  ;;  %1244 = vmatpush1.bf16.msra.mxu1 %v1774_v50  ;;  %v1791_v48 = vcombine.high %v1055_v43, %v1056_v44  ;;  %v778_v50 = vld [vmem:[#allocation2 + $0x350] sm:$0xff] }
  0x69   :  { %966 = vmatprep.subr.bf16.mxu0 %v1745_v51  ;;  %1245 = vmatprep.subr.bf16.mxu1 %v1777_v52  ;;  %v779_v51 = vld [vmem:[#allocation2 + $0x370] sm:$0xff]  ;;  %v1057_v52 = vld [vmem:[#allocation2 + $0x358] sm:$0xff] }
  0x6a   :  { %988 = vmatprep.mubr.bf16.mxu0 %v2157_v56  ;;  %1267 = vmatprep.mubr.bf16.mxu1 %v2157_v56  ;;  %v1783_v56 = vcombine.high %v1047_v8, %v1048_v9  ;;  %v1761_v57 = vcombine.high %v778_v50, %v779_v51  ;;  %v1760_v63 = vcombine.low %v778_v50, %v779_v51 }
  0x6b   :  { %v1792_v0 = vcombine.low %v1057_v52, %v1058_v53 }
  0x6c   :  { %967 = vmatpush1.bf16.msra.mxu0 %v1744_v58  ;;  %1246 = vmatpush1.bf16.msra.mxu1 %v1776_v59  ;;  %v1793_v58 = vcombine.high %v1057_v52, %v1058_v53  ;;  %v780_v59 = vld [vmem:[#allocation2 + $0x390] sm:$0xff] }
  0x6d   :  { %968 = vmatprep.subr.bf16.mxu0 %v1747_v60  ;;  %1247 = vmatprep.subr.bf16.mxu1 %v1779_v61  ;;  %v781_v60 = vld [vmem:[#allocation2 + $0x3b0] sm:$0xff]  ;;  %v1059_v61 = vld [vmem:[#allocation2 + $0x398] sm:$0xff] }
  0x6e   :  { %v1763_v1 = vcombine.high %v780_v59, %v781_v60  ;;  %v1762_v7 = vcombine.low %v780_v59, %v781_v60  ;;  %v1794_v8 = vcombine.low %v1059_v61, %v1060_v62 }
  0x70   :  { %969 = vmatpush1.bf16.msra.mxu0 %v1746_v2  ;;  %1248 = vmatpush1.bf16.msra.mxu1 %v1778_v3  ;;  %v1795_v2 = vcombine.high %v1059_v61, %v1060_v62  ;;  %v782_v3 = vld [vmem:[#allocation2 + $0x3d0] sm:$0xff] }
  0x71   :  { %970 = vmatprep.subr.bf16.mxu0 %v1749_v4  ;;  %1249 = vmatprep.subr.bf16.mxu1 %v1781_v5  ;;  %v783_v4 = vld [vmem:[#allocation2 + $0x3f0] sm:$0xff]  ;;  %v1061_v5 = vld [vmem:[#allocation2 + $0x3d8] sm:$0xff] }
  0x72   :  { %v1765_v9 = vcombine.high %v782_v3, %v783_v4 }
  0x74   :  { %971 = vmatpush1.bf16.msra.mxu0 %v1748_v11  ;;  %1250 = vmatpush1.bf16.msra.mxu1 %v1780_v12  ;;  %v1797_v11 = vcombine.high %v1061_v5, %v1062_v6  ;;  %v1764_v12 = vcombine.low %v782_v3, %v783_v4 }
  0x75   :  { %972 = vmatprep.subr.bf16.mxu0 %v1751_v13  ;;  %1251 = vmatprep.subr.bf16.mxu1 %v1783_v56  ;;  %v1796_v13 = vcombine.low %v1061_v5, %v1062_v6  ;;  %v78_v56 = vlaneseq }
  0x77   :  { %v79_v14 = vshrl.u32 %v78_v56, 7 }
  0x78   :  { %973 = vmatpush1.bf16.msra.mxu0 %v1750_v18  ;;  %1252 = vmatpush1.bf16.msra.mxu1 %v1782_v20 }
  0x79   :  { %974 = vmatprep.subr.bf16.mxu0 %v1753_v21  ;;  %1253 = vmatprep.subr.bf16.mxu1 %v1785_v22  ;;  %v2208_v15 = vsub.s32 0, %v79_v14 }
  0x7c   :  { %975 = vmatpush1.bf16.msra.mxu0 %v1752_v27  ;;  %1254 = vmatpush1.bf16.msra.mxu1 %v1784_v28 }
  0x7d   :  { %976 = vmatprep.subr.bf16.mxu0 %v1755_v29  ;;  %1255 = vmatprep.subr.bf16.mxu1 %v1787_v30 }
  0x80   :  { %977 = vmatpush1.bf16.msra.mxu0 %v1754_v36  ;;  %1256 = vmatpush1.bf16.msra.mxu1 %v1786_v38 }
  0x81   :  { %978 = vmatprep.subr.bf16.mxu0 %v1757_v39  ;;  %1257 = vmatprep.subr.bf16.mxu1 %v1789_v40 }
  0x84   :  { %979 = vmatpush1.bf16.msra.mxu0 %v1756_v45  ;;  %1258 = vmatpush1.bf16.msra.mxu1 %v1788_v46 }
  0x85   :  { %980 = vmatprep.subr.bf16.mxu0 %v1759_v47  ;;  %1259 = vmatprep.subr.bf16.mxu1 %v1791_v48 }
  0x88   :  { %981 = vmatpush1.bf16.msra.mxu0 %v1758_v54  ;;  %1260 = vmatpush1.bf16.msra.mxu1 %v1790_v55 }
  0x89   :  { %982 = vmatprep.subr.bf16.mxu0 %v1761_v57  ;;  %1261 = vmatprep.subr.bf16.mxu1 %v1793_v58 }
  0x8c   :  { %983 = vmatpush1.bf16.msra.mxu0 %v1760_v63  ;;  %1262 = vmatpush1.bf16.msra.mxu1 %v1792_v0 }
  0x8d   :  { %984 = vmatprep.subr.bf16.mxu0 %v1763_v1  ;;  %1263 = vmatprep.subr.bf16.mxu1 %v1795_v2 }
  0x90   :  { %985 = vmatpush1.bf16.msra.mxu0 %v1762_v7  ;;  %1264 = vmatpush1.bf16.msra.mxu1 %v1794_v8 }
  0x91   :  { %986 = vmatprep.subr.bf16.mxu0 %v1765_v9  ;;  %1265 = vmatprep.subr.bf16.mxu1 %v1797_v11 }
  0x94   :  { %987 = vmatpush1.bf16.msra.mxu0 %v1764_v12  ;;  %1266 = vmatpush1.bf16.msra.mxu1 %v1796_v13 }
  0x97   :  { %989 = vmatmul.mubr.bf16.vlgmr.msra.gmra.mrb[12].mxu0 %v2164_v10  ;;  %1268 = vmatmul.mubr.bf16.vlgmr.msra.gmra.mrb[12].mxu1 %v2164_v10  ;;  %v445_v10 = vld [vmem:[%s2503_s2 + $0x2] sm:$0x3] }
  0x98   :  { %998 = vmatprep.mubr.bf16.mxu0 %v2169_v19  ;;  %1277 = vmatprep.mubr.bf16.mxu1 %v2169_v19  ;;  %v2213_v19 = vsub.s32 1, %v79_v14 }
  0x9f   :  { %999 = vmatmul.mubr.bf16.gmra.mrb[16].mxu0 %v2178_v31  ;;  %1278 = vmatmul.mubr.bf16.gmra.mrb[16].mxu1 %v2178_v31  ;;  %v76_v31 = vld [vmem:[%s2503_s2] sm:$0x3] }
  0xa0   :  { %1008 = vmatprep.mubr.bf16.mxu0 %v2183_v37  ;;  %1287 = vmatprep.mubr.bf16.mxu1 %v2183_v37  ;;  %v2219_v37 = vrot.slane %v445_v10, %v2208_v15  ;;  %v2222_v16 = vrot.slane %v76_v31, %v2208_v15  ;;  %v2228_v20 = vrot.slane %v76_v31, %v2213_v19 }
  0xa7   :  { %1009 = vmatmul.mubr.bf16.gmra.mrb[20].mxu0 %v2192_v49  ;;  %1288 = vmatmul.mubr.bf16.gmra.mrb[20].mxu1 %v2192_v49  ;;  %v2225_v49 = vrot.slane %v445_v10, %v2213_v19 }
 0x12a   :  { %v312_v17 = vpop.f32.mrb[0].mxu0  ;;  %v651_v18 = vpop.f32.mrb[0].mxu1 }
 0x12b   :  { %v314_v21 = vpop.f32.mrb[1].mxu0  ;;  %v652_v22 = vadd.f32 %v651_v18, %v2219_v37  ;;  %v653_v23 = vpop.f32.mrb[1].mxu1  ;;  %v313_v25 = vadd.f32 %v312_v17, %v2222_v16 }
 0x12c   :  { %v316_v24 = vpop.f32.mrb[2].mxu0  ;;  %v654_v26 = vadd.f32 %v653_v23, %v2225_v49  ;;  %v655_v27 = vpop.f32.mrb[2].mxu1  ;;  %v315_v33 = vadd.f32 %v314_v21, %v2228_v20 }
 0x12d   :  { %v318_v28 = vpop.f32.mrb[3].mxu0  ;;  %v1722_v29 = vmul.f32 -1.442695, %v652_v22  ;;  %v656_v30 = vadd.f32 %v655_v27, %v2219_v37  ;;  %v657_v32 = vpop.f32.mrb[3].mxu1  ;;  %v317_v36 = vadd.f32 %v316_v24, %v2222_v16  ;;  %v1678_v39 = vmul.f32 -1.442695, %v313_v25 }
 0x12e   :  { %v1723_v34 = vmul.f32 -1.442695, %v654_v26  ;;  %v658_v35 = vadd.f32 %v657_v32, %v2225_v49  ;;  %v319_v40 = vadd.f32 %v318_v28, %v2228_v20  ;;  %v1679_v43 = vmul.f32 -1.442695, %v315_v33 }
 0x12f   :  { %v1724_v38 = vmul.f32 -1.442695, %v656_v30  ;;  %1825 = vpow2.f32 %v1722_v29  ;;  %v1680_v46 = vmul.f32 -1.442695, %v317_v36 }
 0x130   :  { %1827 = vpow2.f32 %v1723_v34  ;;  %v1725_v41 = vmul.f32 -1.442695, %v658_v35  ;;  %v1681_v51 = vmul.f32 -1.442695, %v319_v40  ;;  %v1370_v34 = vld [vmem:[%s2504_s3] sm:$0x3] }
 0x131   :  { %1829 = vpow2.f32 %v1724_v38 }
 0x132   :  { %v322_v42 = vpop.f32.mrb[4].mxu0  ;;  %v661_v44 = vpop.f32.mrb[4].mxu1  ;;  %1831 = vpow2.f32 %v1678_v39 }
 0x133   :  { %v2238_v45 = vpop.f32.mrb[5].mxu0  ;;  %v662_v47 = vadd.f32 %v661_v44, %v2219_v37  ;;  %v663_v48 = vpop.f32.mrb[5].mxu1  ;;  %1833 = vpow2.f32 %v1725_v41  ;;  %v323_v62 = vadd.f32 %v322_v42, %v2222_v16  ;;  %v2264_v42 = vrot.slane %v1370_v34, %v2208_v15 }
 0x134   :  { %v2241_v50 = vpop.f32.mrb[6].mxu0  ;;  %v664_v52 = vadd.f32 %v663_v48, %v2225_v49  ;;  %v665_v53 = vpop.f32.mrb[6].mxu1  ;;  %1835 = vpow2.f32 %v1679_v43 }
 0x135   :  { %v2244_v54 = vpop.f32.mrb[7].mxu0  ;;  %v1726_v55 = vmul.f32 -1.442695, %v662_v47  ;;  %v666_v57 = vadd.f32 %v665_v53, %v2219_v37  ;;  %v667_v58 = vpop.f32.mrb[7].mxu1  ;;  %1837 = vpow2.f32 %v1680_v46  ;;  %v1682_v7 = vmul.f32 -1.442695, %v323_v62 }
 0x136   :  { %v1727_v59 = vmul.f32 -1.442695, %v664_v52  ;;  %v668_v60 = vadd.f32 %v667_v58, %v2225_v49  ;;  %1839 = vpow2.f32 %v1681_v51  ;;  %v2268_v47 = vrot.slane %v1370_v34, %v2213_v19 }
 0x137   :  { %v1728_v61 = vmul.f32 -1.442695, %v666_v57  ;;  %1841 = vpow2.f32 %v1726_v55  ;;  %v325_v51 = vadd.f32 %v2238_v45, %v2228_v20  ;;  %v327_v52 = vadd.f32 %v2241_v50, %v2222_v16 }
 0x138   :  { %1843 = vpow2.f32 %v1727_v59  ;;  %v1729_v1 = vmul.f32 -1.442695, %v668_v60 }
 0x139   :  { %v1826_v0 = vpop.eup %1825  ;;  %1845 = vpow2.f32 %v1728_v61  ;;  %v1683_v45 = vmul.f32 -1.442695, %v325_v51 }
 0x13a   :  { %v2249_v63 = vpop.f32.mrb[8].mxu0  ;;  %v671_v2 = vpop.f32.mrb[8].mxu1  ;;  %v716_v12 = vadd.f32 1.0, %v1826_v0  ;;  %1847 = vpow2.f32 %v1729_v1  ;;  %v1684_v0 = vmul.f32 -1.442695, %v327_v52 }
 0x13b   :  { %v2251_v3 = vpop.f32.mrb[9].mxu0  ;;  %v1828_v4 = vpop.eup %1827  ;;  %1849 = vpow2.f32 %v1682_v7  ;;  %v672_v28 = vadd.f32 %v671_v2, %v2219_v37 }
 0x13c   :  { %v673_v5 = vpop.f32.mrb[9].mxu1  ;;  %v2253_v6 = vpop.f32.mrb[10].mxu0  ;;  %v717_v14 = vadd.f32 1.0, %v1828_v4  ;;  %1851 = vrcp.f32 %v716_v12 }
 0x13d   :  { %v675_v8 = vpop.f32.mrb[10].mxu1  ;;  %v2255_v9 = vpop.f32.mrb[11].mxu0  ;;  %v674_v33 = vadd.f32 %v673_v5, %v2225_v49  ;;  %v1730_v38 = vmul.f32 -1.442695, %v672_v28 }
 0x13e   :  { %v1830_v11 = vpop.eup %1829  ;;  %v677_v13 = vpop.f32.mrb[11].mxu1  ;;  %1853 = vrcp.f32 %v717_v14  ;;  %v676_v39 = vadd.f32 %v675_v8, %v2219_v37 }
 0x13f   :  { %v1832_v56 = vpop.eup %1831  ;;  %v718_v31 = vadd.f32 1.0, %v1830_v11  ;;  %v1731_v43 = vmul.f32 -1.442695, %v674_v33  ;;  %v678_v44 = vadd.f32 %v677_v13, %v2225_v49  ;;  %v329_v49 = vadd.f32 %v2244_v54, %v2228_v20 }
 0x140   :  { %v1834_v10 = vpop.eup %1833  ;;  %v377_v23 = vadd.f32 1.0, %v1832_v56  ;;  %v1732_v53 = vmul.f32 -1.442695, %v676_v39  ;;  %v333_v13 = vadd.f32 %v2249_v63, %v2222_v16 }
 0x141   :  { %v1836_v17 = vpop.eup %1835  ;;  %v719_v18 = vadd.f32 1.0, %v1834_v10  ;;  %1855 = vrcp.f32 %v718_v31  ;;  %v1733_v60 = vmul.f32 -1.442695, %v678_v44  ;;  %v1685_v54 = vmul.f32 -1.442695, %v329_v49 }
 0x142   :  { %v1838_v21 = vpop.eup %1837  ;;  %v378_v25 = vadd.f32 1.0, %v1836_v17  ;;  %v335_v31 = vadd.f32 %v2251_v3, %v2228_v20 }
 0x143   :  { %v1840_v22 = vpop.eup %1839  ;;  %v379_v27 = vadd.f32 1.0, %v1838_v21  ;;  %1857 = vrcp.f32 %v719_v18 }
 0x144   :  { %v1842_v24 = vpop.eup %1841  ;;  %v380_v29 = vadd.f32 1.0, %v1840_v22  ;;  %1859 = vrcp.f32 %v377_v23  ;;  %v1686_v22 = vmul.f32 -1.442695, %v333_v13  ;;  %v337_v23 = vadd.f32 %v2253_v6, %v2222_v16 }
 0x145   :  { %v1844_v26 = vpop.eup %1843  ;;  %v720_v32 = vadd.f32 1.0, %v1842_v24  ;;  %1861 = vrcp.f32 %v378_v25  ;;  %v339_v25 = vadd.f32 %v2255_v9, %v2228_v20  ;;  %v1687_v3 = vmul.f32 -1.442695, %v335_v31 }
 0x146   :  { %v1846_v30 = vpop.eup %1845  ;;  %v721_v35 = vadd.f32 1.0, %v1844_v26  ;;  %1863 = vrcp.f32 %v379_v27  ;;  %v1688_v6 = vmul.f32 -1.442695, %v337_v23 }
 0x147   :  { %v1848_v36 = vpop.eup %1847  ;;  %1865 = vrcp.f32 %v380_v29  ;;  %v722_v40 = vadd.f32 1.0, %v1846_v30  ;;  %v1689_v9 = vmul.f32 -1.442695, %v339_v25 }
 0x148   :  { %v1850_v41 = vpop.eup %1849  ;;  %1867 = vrcp.f32 %v720_v32  ;;  %v723_v48 = vadd.f32 1.0, %v1848_v36 }
 0x149   :  { %v1852_v46 = vpop.eup %1851  ;;  %1869 = vrcp.f32 %v721_v35  ;;  %v381_v57 = vadd.f32 1.0, %v1850_v41 }
 0x14a   :  { %v1854_v37 = vpop.eup %1853  ;;  %1871 = vpow2.f32 %v1730_v38  ;;  %v1382_v59 = vmul.f32 %v1852_v46, %v2264_v42 }
 0x14b   :  { %v1856_v55 = vpop.eup %1855  ;;  %1873 = vrcp.f32 %v722_v40  ;;  %v1383_v61 = vmul.f32 %v1854_v37, %v2268_v47 }
 0x14c   :  { %1875 = vpow2.f32 %v1731_v43  ;;  %v1384_v50 = vmul.f32 %v1856_v55, %v2264_v42  ;;  %v1394_v5 = vmul.f32 1.442695, %v1382_v59  ;;  %v1063_v55 = vld [vmem:[%s2503_s2 + $0x6] sm:$0x3] }
 0x14d   :  { %v1858_v58 = vpop.eup %1857  ;;  %1877 = vrcp.f32 %v723_v48  ;;  %v1396_v8 = vmul.f32 1.442695, %v1383_v61 }
 0x14e   :  { %v2278_v62 = vpop.eup %1859  ;;  %1879 = vpow2.f32 %v1732_v53  ;;  %v1385_v2 = vmul.f32 %v1858_v58, %v2268_v47  ;;  %v1398_v12 = vmul.f32 1.442695, %v1384_v50 }
 0x14f   :  { %v2281_v1 = vpop.eup %1861  ;;  %1881 = vrcp.f32 %v381_v57 }
 0x150   :  { %v2284_v4 = vpop.eup %1863  ;;  %1883 = vpow2.f32 %v1733_v60  ;;  %v1400_v14 = vmul.f32 1.442695, %v1385_v2  ;;  %v784_v60 = vld [vmem:[%s2503_s2 + $0x4] sm:$0x3] }
 0x151   :  { %v2286_v7 = vpop.eup %1865  ;;  %1885 = vpow2.f32 %v1683_v45  ;;  %v2326_v13 = vrot.slane %v784_v60, %v2208_v15  ;;  %v2331_v23 = vrot.slane %v784_v60, %v2213_v19 }
 0x152   :  { %v1868_v11 = vpop.eup %1867  ;;  %1887 = vpow2.f32 %v1684_v0  ;;  %v2319_v0 = vrot.slane %v1063_v55, %v2208_v15 }
 0x153   :  { %v1870_v56 = vpop.eup %1869  ;;  %1889 = vpow2.f32 %v1685_v54  ;;  %v1386_v27 = vmul.f32 %v1868_v11, %v2264_v42 }
 0x154   :  { %v1872_v10 = vpop.eup %1871  ;;  %1891 = vpow2.f32 %v1394_v5  ;;  %v1387_v29 = vmul.f32 %v1870_v56, %v2268_v47 }
 0x155   :  { %v1874_v17 = vpop.eup %1873  ;;  %1893 = vpow2.f32 %v1396_v8  ;;  %v724_v18 = vadd.f32 1.0, %v1872_v10  ;;  %v1402_v36 = vmul.f32 1.442695, %v1386_v27  ;;  %v2323_v8 = vrot.slane %v1063_v55, %v2213_v19 }
 0x156   :  { %v1876_v21 = vpop.eup %1875  ;;  %1895 = vpow2.f32 %v1398_v12  ;;  %v1388_v16 = vmul.f32 %v1874_v17, %v2264_v42  ;;  %v1404_v39 = vmul.f32 1.442695, %v1387_v29 }
 0x157   :  { %v1878_v24 = vpop.eup %1877  ;;  %1897 = vpow2.f32 %v1400_v14  ;;  %v725_v63 = vadd.f32 1.0, %v1876_v21 }
 0x158   :  { %v1880_v26 = vpop.eup %1879  ;;  %1899 = vrcp.f32 %v724_v18  ;;  %v1389_v34 = vmul.f32 %v1878_v24, %v2268_v47  ;;  %v1406_v41 = vmul.f32 1.442695, %v1388_v16 }
 0x159   :  { %v2297_v28 = vpop.eup %1881  ;;  %1901 = vrcp.f32 %v725_v63  ;;  %v726_v30 = vadd.f32 1.0, %v1880_v26 }
 0x15a   :  { %v1884_v32 = vpop.eup %1883  ;;  %1903 = vpow2.f32 %v1686_v22  ;;  %v1408_v44 = vmul.f32 1.442695, %v1389_v34 }
 0x15b   :  { %v1886_v33 = vpop.eup %1885  ;;  %1905 = vrcp.f32 %v726_v30  ;;  %v727_v20 = vadd.f32 1.0, %v1884_v32 }
 0x15c   :  { %v1888_v35 = vpop.eup %1887  ;;  %1907 = vpow2.f32 %v1687_v3  ;;  %v382_v48 = vadd.f32 1.0, %v1886_v33 }
 0x15d   :  { %v1890_v38 = vpop.eup %1889  ;;  %1909 = vrcp.f32 %v727_v20  ;;  %v383_v37 = vadd.f32 1.0, %v1888_v35 }
 0x15e   :  { %v2302_v40 = vpop.eup %1891  ;;  %1911 = vpow2.f32 %v1688_v6  ;;  %v384_v53 = vadd.f32 1.0, %v1890_v38 }
 0x15f   :  { %v2304_v43 = vpop.eup %1893  ;;  %1913 = vpow2.f32 %v1689_v9 }
 0x160   :  { %v2306_v46 = vpop.eup %1895  ;;  %1915 = vpow2.f32 %v1402_v36 }
 0x161   :  { %v2308_v51 = vpop.eup %1897  ;;  %1917 = vpow2.f32 %v1404_v39 }
 0x162   :  { %v1900_v52 = vpop.eup %1899  ;;  %1919 = vpow2.f32 %v1406_v41 }
 0x163   :  { %v1902_v57 = vpop.eup %1901  ;;  %1921 = vpow2.f32 %v1408_v44  ;;  %v1390_v49 = vmul.f32 %v1900_v52, %v2264_v42 }
 0x164   :  { %v1904_v58 = vpop.eup %1903  ;;  %1923 = vrcp.f32 %v382_v48  ;;  %v1391_v59 = vmul.f32 %v1902_v57, %v2268_v47 }
 0x165   :  { %v1906_v61 = vpop.eup %1905  ;;  %1925 = vrcp.f32 %v383_v37  ;;  %v1410_v45 = vmul.f32 1.442695, %v1390_v49  ;;  %v385_v50 = vadd.f32 1.0, %v1904_v58 }
 0x166   :  { %v1908_v2 = vpop.eup %1907  ;;  %1927 = vrcp.f32 %v384_v53  ;;  %v1412_v54 = vmul.f32 1.442695, %v1391_v59  ;;  %v1392_v5 = vmul.f32 %v1906_v61, %v2264_v42 }
 0x167   :  { %v1910_v11 = vpop.eup %1909  ;;  %1929 = vpow2.f32 %v1410_v45  ;;  %v386_v12 = vadd.f32 1.0, %v1908_v2 }
 0x168   :  { %v1912_v14 = vpop.eup %1911  ;;  %1931 = vpow2.f32 %v1412_v54  ;;  %v1414_v10 = vmul.f32 1.442695, %v1392_v5  ;;  %v1393_v31 = vmul.f32 %v1910_v11, %v2268_v47 }
 0x169   :  { %v1914_v21 = vpop.eup %1913  ;;  %1933 = vrcp.f32 %v385_v50  ;;  %v387_v42 = vadd.f32 1.0, %v1912_v14 }
 0x16a   :  { %v990_v56 = vpop.f32.mrb[12].mxu0  ;;  %v1269_v17 = vpop.f32.mrb[12].mxu1  ;;  %1935 = vpow2.f32 %v1414_v10  ;;  %v1416_v26 = vmul.f32 1.442695, %v1393_v31  ;;  %v388_v27 = vadd.f32 1.0, %v1914_v21 }
 0x16b   :  { %v992_v18 = vpop.f32.mrb[13].mxu0  ;;  %v1270_v22 = vadd.f32 %v1269_v17, %v2319_v0  ;;  %v1271_v24 = vpop.f32.mrb[13].mxu1  ;;  %1937 = vrcp.f32 %v386_v12  ;;  %v991_v32 = vadd.f32 %v990_v56, %v2326_v13 }
 0x16c   :  { %v994_v63 = vpop.f32.mrb[14].mxu0  ;;  %v2333_v25 = vpop.eup %1915  ;;  %v1272_v3 = vadd.f32 %v1271_v24, %v2323_v8  ;;  %1939 = vpow2.f32 %v1416_v26  ;;  %v993_v9 = vadd.f32 %v992_v18, %v2331_v23 }
 0x16d   :  { %v1273_v47 = vpop.f32.mrb[14].mxu1  ;;  %v996_v29 = vpop.f32.mrb[15].mxu0  ;;  %v1798_v33 = vmul.f32 -1.442695, %v1270_v22  ;;  %1941 = vrcp.f32 %v387_v42  ;;  %v995_v41 = vadd.f32 %v994_v63, %v2326_v13 }
 0x16e   :  { %v2336_v30 = vpop.eup %1917  ;;  %v1275_v16 = vpop.f32.mrb[15].mxu1  ;;  %v1274_v34 = vadd.f32 %v1273_v47, %v2319_v0  ;;  %1943 = vrcp.f32 %v388_v27  ;;  %v1799_v36 = vmul.f32 -1.442695, %v1272_v3  ;;  %v997_v57 = vadd.f32 %v996_v29, %v2331_v23 }
 0x16f   :  { %v2339_v6 = vpop.eup %1919  ;;  %v1276_v38 = vadd.f32 %v1275_v16, %v2323_v8  ;;  %1945 = vtanh.f32 %v991_v32 }
 0x170   :  { %v2342_v20 = vpop.eup %1921  ;;  %1947 = vpow2.f32 %v1798_v33  ;;  %v1800_v37 = vmul.f32 -1.442695, %v1274_v34 }
 0x171   :  { %v2345_v35 = vpop.eup %1923  ;;  %1949 = vtanh.f32 %v993_v9  ;;  %v1801_v61 = vmul.f32 -1.442695, %v1276_v38 }
 0x172   :  { %v2348_v39 = vpop.eup %1925  ;;  %v1000_v44 = vpop.f32.mrb[16].mxu0  ;;  %1951 = vpow2.f32 %v1799_v36 }
 0x173   :  { %v2351_v48 = vpop.eup %1927  ;;  %v1279_v52 = vpop.f32.mrb[16].mxu1  ;;  %1953 = vtanh.f32 %v995_v41  ;;  %v1001_v5 = vadd.f32 %v1000_v44, %v2326_v13 }
 0x174   :  { %v1002_v53 = vpop.f32.mrb[17].mxu0  ;;  %v2353_v55 = vpop.eup %1929  ;;  %v1280_v49 = vadd.f32 %v1279_v52, %v2319_v0  ;;  %1955 = vpow2.f32 %v1800_v37 }
 0x175   :  { %v1281_v58 = vpop.f32.mrb[17].mxu1  ;;  %v1004_v59 = vpop.f32.mrb[18].mxu0  ;;  %1957 = vtanh.f32 %v997_v57  ;;  %v1003_v31 = vadd.f32 %v1002_v53, %v2331_v23 }
 0x176   :  { %v2357_v60 = vpop.eup %1931  ;;  %v1282_v45 = vadd.f32 %v1281_v58, %v2323_v8  ;;  %v1283_v50 = vpop.f32.mrb[18].mxu1  ;;  %v1802_v56 = vmul.f32 -1.442695, %v1280_v49  ;;  %1959 = vpow2.f32 %v1801_v61  ;;  %v1005_v42 = vadd.f32 %v1004_v59, %v2326_v13 }
 0x177   :  { %v1006_v2 = vpop.f32.mrb[19].mxu0  ;;  %v2360_v54 = vpop.eup %1933  ;;  %v1284_v14 = vadd.f32 %v1283_v50, %v2319_v0  ;;  %1961 = vtanh.f32 %v1001_v5 }
 0x178   :  { %v1285_v11 = vpop.f32.mrb[19].mxu1  ;;  %v2363_v12 = vpop.eup %1935  ;;  %v1803_v18 = vmul.f32 -1.442695, %v1282_v45  ;;  %1963 = vpow2.f32 %v1802_v56  ;;  %v1007_v34 = vadd.f32 %v1006_v2, %v2331_v23 }
 0x179   :  { %v2366_v10 = vpop.eup %1937  ;;  %v1804_v63 = vmul.f32 -1.442695, %v1284_v14  ;;  %v1286_v26 = vadd.f32 %v1285_v11, %v2323_v8  ;;  %1965 = vtanh.f32 %v1003_v31 }
 0x17a   :  { %v2369_v17 = vpop.eup %1939  ;;  %v1010_v22 = vpop.f32.mrb[20].mxu0  ;;  %1967 = vpow2.f32 %v1803_v18 }
 0x17b   :  { %v2371_v21 = vpop.eup %1941  ;;  %v1289_v27 = vpop.f32.mrb[20].mxu1  ;;  %1969 = vtanh.f32 %v1005_v42  ;;  %v1805_v53 = vmul.f32 -1.442695, %v1286_v26 }
 0x17c   :  { %v2374_v24 = vpop.eup %1943  ;;  %v1012_v3 = vpop.f32.mrb[21].mxu0  ;;  %1971 = vpow2.f32 %v1804_v63  ;;  %v1290_v57 = vadd.f32 %v1289_v27, %v2319_v0 }
 0x17d   :  { %v1946_v47 = vpop.eup %1945  ;;  %v1291_v29 = vpop.f32.mrb[21].mxu1 }
 0x17e   :  { %v1014_v32 = vpop.f32.mrb[22].mxu0  ;;  %v1948_v16 = vpop.eup %1947  ;;  %v1418_v33 = vmul.f32 %v1946_v47, %v2278_v62  ;;  %v1011_v62 = vadd.f32 %v1010_v22, %v2326_v13  ;;  %v1292_v5 = vadd.f32 %v1291_v29, %v2323_v8  ;;  %v1013_v22 = vadd.f32 %v1012_v3, %v2331_v23 }
 0x17f   :  { %v1293_v9 = vpop.f32.mrb[22].mxu1  ;;  %v1016_v36 = vpop.f32.mrb[23].mxu0  ;;  %v1334_v41 = vadd.f32 1.0, %v1948_v16 }
 0x180   :  { %v1950_v38 = vpop.eup %1949  ;;  %v1295_v44 = vpop.f32.mrb[23].mxu1  ;;  %v2384_v45 = vmul.f32 %v2302_v40, %v1418_v33  ;;  %v1807_v47 = vmul.f32 -1.442695, %v1292_v5 }
 0x181   :  { %v1952_v37 = vpop.eup %1951  ;;  %v1419_v52 = vmul.f32 %v1950_v38, %v2281_v1  ;;  %1973 = vrcp.f32 %v1334_v41 }
 0x182   :  { %v1954_v49 = vpop.eup %1953  ;;  %v1335_v58 = vadd.f32 1.0, %v1952_v37  ;;  %1975 = vtanh.f32 %v1007_v34  ;;  %v1296_v34 = vadd.f32 %v1295_v44, %v2323_v8  ;;  %v1017_v37 = vadd.f32 %v1016_v36, %v2331_v23 }
 0x183   :  { %v1956_v59 = vpop.eup %1955  ;;  %v1420_v61 = vmul.f32 %v1954_v49, %v2284_v4  ;;  %v2387_v50 = vmul.f32 %v2304_v43, %v1419_v52  ;;  %v1806_v4 = vmul.f32 -1.442695, %v1290_v57 }
 0x184   :  { %v1958_v1 = vpop.eup %1957  ;;  %1977 = vrcp.f32 %v1335_v58  ;;  %v1336_v2 = vadd.f32 1.0, %v1956_v59 }
 0x185   :  { %v1960_v11 = vpop.eup %1959  ;;  %v2391_v56 = vmul.f32 %v2306_v46, %v1420_v61  ;;  %v1421_v14 = vmul.f32 %v1958_v1, %v2286_v7  ;;  %1979 = vpow2.f32 %v1805_v53  ;;  %v1294_v46 = vadd.f32 %v1293_v9, %v2319_v0 }
 0x186   :  { %v1962_v31 = vpop.eup %1961  ;;  %1981 = vrcp.f32 %v1336_v2  ;;  %v1337_v40 = vadd.f32 1.0, %v1960_v11 }
 0x187   :  { %v1964_v18 = vpop.eup %1963  ;;  %v1433_v43 = vmul.f32 %v2308_v51, %v1421_v14  ;;  %v1422_v42 = vmul.f32 %v1962_v31, %v2297_v28  ;;  %1983 = vtanh.f32 %v1011_v62  ;;  %v1015_v28 = vadd.f32 %v1014_v32, %v2326_v13 }
 0x188   :  { %v1966_v63 = vpop.eup %1965  ;;  %1985 = vrcp.f32 %v1337_v40  ;;  %v1338_v26 = vadd.f32 1.0, %v1964_v18  ;;  %v1808_v38 = vmul.f32 -1.442695, %v1294_v46  ;;  %v1809_v32 = vmul.f32 -1.442695, %v1296_v34 }
 0x189   :  { %v1968_v27 = vpop.eup %1967  ;;  %v1423_v7 = vmul.f32 %v1966_v63, %v2345_v35  ;;  %1987 = vpow2.f32 %v1806_v4  ;;  %v1434_v29 = vmul.f32 %v2333_v25, %v1422_v42 }
 0x18a   :  { %v1970_v16 = vpop.eup %1969  ;;  %1989 = vrcp.f32 %v1338_v26  ;;  %v1339_v51 = vadd.f32 1.0, %v1968_v27 }
 0x18b   :  { %v1972_v33 = vpop.eup %1971  ;;  %v1424_v3 = vmul.f32 %v1970_v16, %v2348_v39  ;;  %1991 = vtanh.f32 %v1013_v22  ;;  %v1435_v0 = vmul.f32 %v2336_v30, %v1423_v7 }
 0x18c   :  { %v1974_v9 = vpop.eup %1973  ;;  %1993 = vrcp.f32 %v1339_v51  ;;  %v1340_v35 = vadd.f32 1.0, %v1972_v33 }
 0x18d   :  { %v1976_v41 = vpop.eup %1975  ;;  %v1436_v25 = vmul.f32 %v2339_v6, %v1424_v3  ;;  %1995 = vpow2.f32 %v1807_v47 }
 0x18e   :  { %v1978_v52 = vpop.eup %1977  ;;  %1997 = vrcp.f32 %v1340_v35  ;;  %v1425_v13 = vmul.f32 %v1976_v41, %v2351_v48 }
 0x18f   :  { %v1980_v39 = vpop.eup %1979  ;;  %1999 = vtanh.f32 %v1015_v28 }
 0x190   :  { %v1982_v8 = vpop.eup %1981  ;;  %v1437_v30 = vmul.f32 %v2342_v20, %v1425_v13  ;;  %v1341_v44 = vadd.f32 1.0, %v1980_v39  ;;  %2001 = vpow2.f32 %v1808_v38 }
 0x191   :  { %v1984_v53 = vpop.eup %1983  ;;  %2003 = vtanh.f32 %v1017_v37 }
 0x192   :  { %v1986_v57 = vpop.eup %1985  ;;  %2005 = vrcp.f32 %v1341_v44  ;;  %v1426_v6 = vmul.f32 %v1984_v53, %v2360_v54 }
 0x193   :  { %v1988_v49 = vpop.eup %1987  ;;  %2007 = vpow2.f32 %v1809_v32 }
 0x194   :  { %v1990_v23 = vpop.eup %1989  ;;  %v1438_v36 = vmul.f32 %v2353_v55, %v1426_v6  ;;  %v1342_v48 = vadd.f32 1.0, %v1988_v49  ;;  %2009 = vtanh.f32 %v2384_v45 }
 0x195   :  { %v1992_v58 = vpop.eup %1991  ;;  %2011 = vtanh.f32 %v2387_v50 }
 0x196   :  { %v1994_v20 = vpop.eup %1993  ;;  %2013 = vrcp.f32 %v1342_v48  ;;  %v1427_v62 = vmul.f32 %v1992_v58, %v2366_v10 }
 0x197   :  { %v1996_v59 = vpop.eup %1995  ;;  %2015 = vtanh.f32 %v2391_v56 }
 0x198   :  { %v1998_v61 = vpop.eup %1997  ;;  %v1439_v54 = vmul.f32 %v2357_v60, %v1427_v62  ;;  %v1343_v1 = vadd.f32 1.0, %v1996_v59  ;;  %2017 = vtanh.f32 %v1433_v43 }
 0x199   :  { %v2000_v2 = vpop.eup %1999  ;;  %2019 = vtanh.f32 %v1434_v29 }
 0x19a   :  { %v2002_v55 = vpop.eup %2001  ;;  %2021 = vrcp.f32 %v1343_v1  ;;  %v1428_v45 = vmul.f32 %v2000_v2, %v2371_v21 }
 0x19b   :  { %v2004_v5 = vpop.eup %2003  ;;  %v1344_v50 = vadd.f32 1.0, %v2002_v55  ;;  %2023 = vtanh.f32 %v1435_v0 }
 0x19c   :  { %v2006_v11 = vpop.eup %2005  ;;  %v1440_v10 = vmul.f32 %v2363_v12, %v1428_v45  ;;  %v1429_v14 = vmul.f32 %v2004_v5, %v2374_v24  ;;  %2025 = vtanh.f32 %v1436_v25 }
 0x19d   :  { %v2008_v56 = vpop.eup %2007  ;;  %2027 = vrcp.f32 %v1344_v50 }
 0x19e   :  { %v2010_v60 = vpop.eup %2009  ;;  %v1441_v4 = vmul.f32 %v2369_v17, %v1429_v14  ;;  %v1345_v31 = vadd.f32 1.0, %v2008_v56  ;;  %2029 = vtanh.f32 %v1437_v30 }
 0x19f   :  { %v2012_v40 = vpop.eup %2011  ;;  %v1454_v18 = vmul.f32 %v2010_v60, %v1974_v9  ;;  %2031 = vtanh.f32 %v1438_v36 }
 0x1a0   :  { %v2014_v21 = vpop.eup %2013  ;;  %2033 = vrcp.f32 %v1345_v31  ;;  %v1455_v43 = vmul.f32 %v2012_v40, %v1978_v52 }
 0x1a1   :  { %v2016_v42 = vpop.eup %2015  ;;  %2035 = vtanh.f32 %v1439_v54 }
 0x1a2   :  { %v2018_v22 = vpop.eup %2017  ;;  %v1466_v12 = vadd.f32 %v1455_v43, %v1454_v18  ;;  %v1456_v63 = vmul.f32 %v2016_v42, %v1982_v8  ;;  %2037 = vtanh.f32 %v1440_v10 }
 0x1a3   :  { %v2020_v24 = vpop.eup %2019  ;;  %v1457_v26 = vmul.f32 %v2018_v22, %v1986_v57  ;;  %2039 = vtanh.f32 %v1441_v4 }
 0x1a4   :  { %v2022_v46 = vpop.eup %2021  ;;  %1467 = vadd.xlane.f32.xlu0 %v1466_v12  ;;  %v1458_v17 = vmul.f32 %v2020_v24, %v1990_v23 }
 0x1a5   :  { %v2024_v27 = vpop.eup %2023  ;;  %v1469_v47 = vadd.f32 %v1457_v26, %v1456_v63 }
 0x1a6   :  { %v2026_v7 = vpop.eup %2025  ;;  %v1459_v29 = vmul.f32 %v2024_v27, %v1994_v20 }
 0x1a7   :  { %v2028_v16 = vpop.eup %2027  ;;  %v1460_v51 = vmul.f32 %v2026_v7, %v1998_v61 }
 0x1a8   :  { %v2030_v28 = vpop.eup %2029  ;;  %1470 = vadd.xlane.f32.xlu0 %v1469_v47  ;;  %v1472_v33 = vadd.f32 %v1459_v29, %v1458_v17 }
 0x1a9   :  { %v2032_v3 = vpop.eup %2031  ;;  %v1461_v34 = vmul.f32 %v2030_v28, %v2006_v11 }
 0x1aa   :  { %v2034_v0 = vpop.eup %2033  ;;  %1473 = vadd.xlane.f32.xlu1 %v1472_v33  ;;  %v1462_v9 = vmul.f32 %v2032_v3, %v2014_v21 }
 0x1ab   :  { %v2036_v35 = vpop.eup %2035  ;;  %v1475_v41 = vadd.f32 %v1461_v34, %v1460_v51 }
 0x1ac   :  { %v2038_v38 = vpop.eup %2037  ;;  %v1463_v25 = vmul.f32 %v2036_v35, %v2022_v46  ;;  %v1587_v35 = vld [vmem:[%s2506_s5] sm:$0x3] }
 0x1ad   :  { %v2040_v37 = vpop.eup %2039  ;;  %v1464_v52 = vmul.f32 %v2038_v38, %v2028_v16 }
 0x1ae   :  { %1476 = vadd.xlane.f32.xlu1 %v1475_v41  ;;  %v1478_v13 = vadd.f32 %v1463_v25, %v1462_v9  ;;  %v1465_v39 = vmul.f32 %v2040_v37, %v2034_v0  ;;  %v1563_v0 = vld [vmem:[%s2505_s4] sm:$0x3]  ;;  %s2104_s4 = smov [#allocation5]  }
 0x1af   :  { %v1568_v37 = vrot.slane %v1563_v0, %v2208_v15  ;;  %s1628_s5 = sshll.u32 %s2104_s4, 4  ;;  %s1629_s5 = int_to_ptr.vmem [resolvable:$true] %s1628_s5 }
 0x1b0   :  { %1479 = vadd.xlane.f32.xlu0 %v1478_v13  ;;  %v1481_v32 = vadd.f32 %v1465_v39, %v1464_v52  ;;  %s2075_s9 = scalar_lea.vmem %s1629_s5, 1536  ;;  %p2080_p9 = scmp.lt.s32.totalorder %s1629_s5, %s1629_s5 }
 0x1b1   :  { %p2076_p8 = scmp.ne.s32.totalorder %s1629_s5, %s2075_s9  ;;  %p2081_p10 = scmp.lt.s32.totalorder %s2075_s9, %s2075_s9 }
 0x1b2   :  { %1482 = vadd.xlane.f32.xlu1 %v1481_v32  ;;  %v1592_v32 = vrot.slane %v1587_v35, %v2208_v15 }
 0x1b3   :  { %p2082_p11 = por %p2081_p10, %p2080_p9 }
 0x1b5   :  { %p2083_p12 = pnand %p2082_p11, %p2076_p8 }
 0x231   :  { %v1468_v8 = vpop.xlane.xlu0 %1467 }
 0x232   :  { %v1485_v30 = vmul.f32 0.00390625, %v1468_v8  ;;  %v1596_v8 = vrot.slane %v1587_v35, %v2213_v19 }
 0x234   :  { %v2419_v44 = vsub.f32 %v1454_v18, %v1485_v30  ;;  %v2421_v53 = vsub.f32 %v1455_v43, %v1485_v30 }
 0x235   :  { %v1471_v57 = vpop.xlane.xlu0 %1470 }
 0x236   :  { %v1486_v6 = vmul.f32 0.00390625, %v1471_v57  ;;  %v1503_v49 = vmul.f32 %v2419_v44, %v2419_v44  ;;  %v1504_v23 = vmul.f32 %v2421_v53, %v2421_v53 }
 0x237   :  { %v1474_v36 = vpop.xlane.xlu1 %1473 }
 0x238   :  { %v2427_v48 = vsub.f32 %v1456_v63, %v1486_v6  ;;  %v2429_v58 = vsub.f32 %v1457_v26, %v1486_v6  ;;  %v1487_v20 = vmul.f32 0.00390625, %v1474_v36  ;;  %v1515_v62 = vadd.f32 %v1504_v23, %v1503_v49 }
 0x23a   :  { %v2431_v59 = vsub.f32 %v1458_v17, %v1487_v20  ;;  %v2433_v61 = vsub.f32 %v1459_v29, %v1487_v20  ;;  %1516 = vadd.xlane.f32.xlu0 %v1515_v62  ;;  %v1505_v54 = vmul.f32 %v2427_v48, %v2427_v48  ;;  %v1506_v1 = vmul.f32 %v2429_v58, %v2429_v58 }
 0x23b   :  { %v1477_v2 = vpop.xlane.xlu1 %1476 }
 0x23c   :  { %v1488_v55 = vmul.f32 0.00390625, %v1477_v2  ;;  %v1518_v45 = vadd.f32 %v1506_v1, %v1505_v54  ;;  %v1507_v5 = vmul.f32 %v2431_v59, %v2431_v59  ;;  %v1508_v50 = vmul.f32 %v2433_v61, %v2433_v61 }
 0x23d   :  { %v1480_v11 = vpop.xlane.xlu0 %1479 }
 0x23e   :  { %v2443_v10 = vsub.f32 %v1460_v51, %v1488_v55  ;;  %v2445_v14 = vsub.f32 %v1461_v34, %v1488_v55  ;;  %1519 = vadd.xlane.f32.xlu1 %v1518_v45  ;;  %v1489_v56 = vmul.f32 0.00390625, %v1480_v11  ;;  %v1521_v60 = vadd.f32 %v1508_v50, %v1507_v5 }
 0x23f   :  { %v1483_v4 = vpop.xlane.xlu1 %1482 }
 0x240   :  { %v2447_v31 = vsub.f32 %v1462_v9, %v1489_v56  ;;  %v2449_v40 = vsub.f32 %v1463_v25, %v1489_v56  ;;  %1522 = vadd.xlane.f32.xlu0 %v1521_v60  ;;  %v1490_v18 = vmul.f32 0.00390625, %v1483_v4  ;;  %v1509_v21 = vmul.f32 %v2443_v10, %v2443_v10 }
 0x241   :  { %v1510_v43 = vmul.f32 %v2445_v14, %v2445_v14 }
 0x242   :  { %v2455_v42 = vsub.f32 %v1464_v52, %v1490_v18  ;;  %v2457_v22 = vsub.f32 %v1465_v39, %v1490_v18  ;;  %v1511_v12 = vmul.f32 %v2447_v31, %v2447_v31  ;;  %v1512_v63 = vmul.f32 %v2449_v40, %v2449_v40 }
 0x243   :  { %v1524_v24 = vadd.f32 %v1510_v43, %v1509_v21  ;;  %v1572_v52 = vrot.slane %v1563_v0, %v2213_v19 }
 0x244   :  { %v1527_v26 = vadd.f32 %v1512_v63, %v1511_v12  ;;  %v1513_v46 = vmul.f32 %v2455_v42, %v2455_v42  ;;  %v1514_v17 = vmul.f32 %v2457_v22, %v2457_v22 }
 0x245   :  { %1525 = vadd.xlane.f32.xlu1 %v1524_v24 }
 0x246   :  { %1528 = vadd.xlane.f32.xlu0 %v1527_v26  ;;  %v1530_v27 = vadd.f32 %v1514_v17, %v1513_v46 }
 0x249   :  { %1531 = vadd.xlane.f32.xlu1 %v1530_v27 }
 0x2c7   :  { %v1517_v7 = vpop.xlane.xlu0 %1516 }
 0x2c8   :  { %v1533_v47 = vmul.f32 0.00390625, %v1517_v7 }
 0x2ca   :  { %v1539_v29 = vadd.f32 1e-05, %v1533_v47 }
 0x2cb   :  { %v1520_v16 = vpop.xlane.xlu1 %1519 }
 0x2cc   :  { %2041 = vrsqrt.f32 %v1539_v29  ;;  %v1534_v51 = vmul.f32 0.00390625, %v1520_v16 }
 0x2cd   :  { %v1523_v28 = vpop.xlane.xlu0 %1522 }
 0x2ce   :  { %v1540_v33 = vadd.f32 1e-05, %v1534_v51  ;;  %v1535_v3 = vmul.f32 0.00390625, %v1523_v28 }
 0x2d0   :  { %2043 = vrsqrt.f32 %v1540_v33  ;;  %v1541_v34 = vadd.f32 1e-05, %v1535_v3 }
 0x2d2   :  { %2045 = vrsqrt.f32 %v1541_v34  ;;  %v1526_v9 = vpop.xlane.xlu1 %1525 }
 0x2d3   :  { %v1536_v38 = vmul.f32 0.00390625, %v1526_v9  ;;  %v1529_v41 = vpop.xlane.xlu0 %1528 }
 0x2d4   :  { %v1537_v25 = vmul.f32 0.00390625, %v1529_v41 }
 0x2d5   :  { %v1542_v13 = vadd.f32 1e-05, %v1536_v38 }
 0x2d6   :  { %v2042_v39 = vpop.eup %2041  ;;  %v1543_v30 = vadd.f32 1e-05, %v1537_v25  ;;  %v1532_v57 = vpop.xlane.xlu1 %1531 }
 0x2d7   :  { %v1551_v6 = vmul.f32 %v2042_v39, %v2419_v44  ;;  %v1552_v49 = vmul.f32 %v2042_v39, %v2421_v53  ;;  %2047 = vrsqrt.f32 %v1542_v13  ;;  %v1538_v23 = vmul.f32 0.00390625, %v1532_v57 }
 0x2d8   :  { %2049 = vrsqrt.f32 %v1543_v30 }
 0x2d9   :  { %v1575_v36 = vmul.f32 %v1568_v37, %v1551_v6  ;;  %v1576_v20 = vmul.f32 %v1572_v52, %v1552_v49  ;;  %v1544_v62 = vadd.f32 1e-05, %v1538_v23 }
 0x2da   :  { %v2044_v54 = vpop.eup %2043 }
 0x2db   :  { %v1599_v1 = vadd.f32 %v1592_v32, %v1575_v36  ;;  %v1600_v2 = vadd.f32 %v1596_v8, %v1576_v20  ;;  %v1553_v55 = vmul.f32 %v2044_v54, %v2427_v48  ;;  %v1554_v15 = vmul.f32 %v2044_v54, %v2429_v58 }
 0x2dc   :  { %v2046_v19 = vpop.eup %2045  ;;  %2051 = vrsqrt.f32 %v1544_v62 }
 0x2dd   :  { %1611 = vst [vmem:[#allocation5] sm:$0xff] %v1599_v1  ;;  %1612 = vst [vmem:[#allocation5 + $0x8] sm:$0xff] %v1600_v2  ;;  %v1577_v44 = vmul.f32 %v1568_v37, %v1553_v55  ;;  %v1578_v45 = vmul.f32 %v1572_v52, %v1554_v15  ;;  %v1555_v53 = vmul.f32 %v2046_v19, %v2431_v59 }
 0x2de   :  { %v1556_v5 = vmul.f32 %v2046_v19, %v2433_v61 }
 0x2df   :  { %v1601_v50 = vadd.f32 %v1592_v32, %v1577_v44  ;;  %v1602_v11 = vadd.f32 %v1596_v8, %v1578_v45  ;;  %v1579_v56 = vmul.f32 %v1568_v37, %v1555_v53 }
 0x2e0   :  { %v1580_v60 = vmul.f32 %v1572_v52, %v1556_v5 }
 0x2e1   :  { %v2048_v4 = vpop.eup %2047  ;;  %1613 = vst [vmem:[#allocation5 + $0x10] sm:$0xff] %v1601_v50  ;;  %1614 = vst [vmem:[#allocation5 + $0x18] sm:$0xff] %v1602_v11  ;;  %v1603_v48 = vadd.f32 %v1592_v32, %v1579_v56 }
 0x2e2   :  { %v1604_v18 = vadd.f32 %v1596_v8, %v1580_v60  ;;  %v2050_v58 = vpop.eup %2049  ;;  %v1557_v21 = vmul.f32 %v2048_v4, %v2443_v10  ;;  %v1558_v43 = vmul.f32 %v2048_v4, %v2445_v14 }
 0x2e3   :  { %1615 = vst [vmem:[#allocation5 + $0x20] sm:$0xff] %v1603_v48  ;;  %v1559_v59 = vmul.f32 %v2050_v58, %v2447_v31  ;;  %v1560_v61 = vmul.f32 %v2050_v58, %v2449_v40 }
 0x2e4   :  { %1616 = vst [vmem:[#allocation5 + $0x28] sm:$0xff] %v1604_v18  ;;  %v1581_v12 = vmul.f32 %v1568_v37, %v1557_v21  ;;  %v1582_v63 = vmul.f32 %v1572_v52, %v1558_v43 }
 0x2e5   :  { %v1583_v24 = vmul.f32 %v1568_v37, %v1559_v59  ;;  %v1584_v26 = vmul.f32 %v1572_v52, %v1560_v61 }
 0x2e6   :  { %v2052_v46 = vpop.eup %2051  ;;  %v1605_v17 = vadd.f32 %v1592_v32, %v1581_v12  ;;  %v1606_v27 = vadd.f32 %v1596_v8, %v1582_v63 }
 0x2e7   :  { %v1607_v7 = vadd.f32 %v1592_v32, %v1583_v24  ;;  %v1608_v47 = vadd.f32 %v1596_v8, %v1584_v26  ;;  %v1561_v29 = vmul.f32 %v2052_v46, %v2455_v42  ;;  %v1562_v10 = vmul.f32 %v2052_v46, %v2457_v22 }
 0x2e8   :  { %1617 = vst [vmem:[#allocation5 + $0x30] sm:$0xff] %v1605_v17  ;;  %1618 = vst [vmem:[#allocation5 + $0x38] sm:$0xff] %v1606_v27 }
 0x2e9   :  { %1619 = vst [vmem:[#allocation5 + $0x40] sm:$0xff] %v1607_v7  ;;  %1620 = vst [vmem:[#allocation5 + $0x48] sm:$0xff] %v1608_v47  ;;  %v1585_v14 = vmul.f32 %v1568_v37, %v1561_v29  ;;  %v1586_v31 = vmul.f32 %v1572_v52, %v1562_v10 }
 0x2eb   :  { %v1609_v40 = vadd.f32 %v1592_v32, %v1585_v14  ;;  %v1610_v16 = vadd.f32 %v1596_v8, %v1586_v31 }
 0x2ed   :  { %1621 = vst [vmem:[#allocation5 + $0x50] sm:$0xff] %v1609_v40  ;;  %1622 = vst [vmem:[#allocation5 + $0x58] sm:$0xff] %v1610_v16 }
 0x2ee   :  { %2086 = shalt.err (!%p2083_p12)
}
 0x2ef   :  { %s2087_s11 = scalar_lea.hbm %s2507_s6, 1536 }
 0x2f0   :  { %p2088_p13 = scmp.ne.s32.totalorder %s2507_s6, %s2087_s11  ;;  %p2091_p0 = scmp.lt.u32.totalorder %s2087_s11, %s2507_s6 }
 0x2f2   :  { %p2093_p1 = pnand %p2091_p0, %p2088_p13 }
 0x2f4   :  { %2096 = shalt.err (!%p2093_p1)
}
 0x2f5   :  { %s2105_s16 = smov 256   ;;  %s2106_s17 = smov 16  }
 0x2f6   :  { %1634 = dma.vmem_to_hbm [thread:$0]  %s1629_s5, 1536, %s2507_s6, [#allocation4], %s2105_s16, %s2105_s16, %s2106_s17  }
 0x2f7   :  { %2099 = dma.done.wait [#allocation4], 1536  }
 0x2f8   :  { %2100 = vsyncadd [#allocation4], 4294965760 }
 0x2f9   :  { %1638 = vsyncpa [#allocation3], 1 }
 0x2fa   :  { %1639 = vsyncpa [#allocation4], 1 }

</bundles_post_ra>
